<compile_context>
chip_gen: v6e
topology: v6e:2x2x1
jax: 0.10.0
libtpu: 0.0.40
codegen_flags: <defaults>
</compile_context>

<pallas_src>
import functools

import jax
import jax.numpy as jnp
from jax.experimental import pallas as pl
from jax.experimental.pallas import tpu as pltpu


def _dwconv_bn_kernel(H, W, K, eps, x_ref, w_ref, gamma_ref, beta_ref, o_ref):
    """Fused depthwise KxK conv + training-mode BatchNorm, one 128-channel block.

    x_ref:     (H + 2p, W + 2p, Cb)  input, H/W halo pre-padded in HBM, channels-last
    w_ref:     (K, K, Cb)            depthwise filter taps (per-channel)
    gamma_ref: (1, Cb)               BN scale
    beta_ref:  (1, Cb)               BN shift
    o_ref:     (H, W, Cb)            output
    """
    Cb = o_ref.shape[-1]

    xp = x_ref[...]                        # (Hp, Wp, Cb) -- ~14 vregs at Cb=128
    w = w_ref[...]                         # (K, K, Cb)   -- hoisted weight load

    # Depthwise conv.  kw outermost: one sublane (W-axis) shift per kw (5 total,
    # XLU work); kh inner: leading-dim slab selection, effectively free.
    acc = jnp.zeros((H, W, Cb), jnp.float32)
    for kw in range(K):
        shifted = xp[:, kw:kw + W, :]      # (Hp, W, Cb)  sublane shift, once per kw
        for kh in range(K):
            tap = shifted[kh:kh + H]       # (H, W, Cb)   leading-dim slab select
            acc = acc + tap * w[kh, kw, :]  # per-channel weight broadcast on lanes

    # Training-mode BatchNorm (batch stats over N*H*W with N == 1), folded into a
    # single per-channel scale/shift -> one epilogue pass over acc.
    inv_n = 1.0 / float(H * W)
    s1 = jnp.sum(acc, axis=(0, 1), keepdims=True)            # (1, 1, Cb)
    s2 = jnp.sum(acc * acc, axis=(0, 1), keepdims=True)       # (1, 1, Cb)
    mean = s1 * inv_n
    var = jnp.maximum(s2 * inv_n - mean * mean, 0.0)          # biased variance
    scale = gamma_ref[0, :] * jax.lax.rsqrt(var + eps)        # (1, 1, Cb)
    shift = beta_ref[0, :] - mean * scale                     # (1, 1, Cb)
    o_ref[...] = acc * scale + shift


def dwconv_bn(x_nchw, weight_oihw, gamma, beta, eps=1e-5, c_blk=128):
    """NCHW in / NCHW out, matching the PyTorch module's forward."""
    N, C, H, W = x_nchw.shape
    assert N == 1, "BN batch statistics implemented for N == 1 (matches the module)"
    K = weight_oihw.shape[-1]
    pad = (K - 1) // 2
    Hp, Wp = H + 2 * pad, W + 2 * pad

    assert c_blk % 128 == 0, "channel block must be lane-dense (multiple of 128)"
    C_pad = ((C + c_blk - 1) // c_blk) * c_blk            # 1392 -> 1408 at c_blk=128
    num_blocks = C_pad // c_blk

    # NCHW -> HWC (channels on the 128-lane axis).  Single jnp.pad handles the
    # H halo, W halo, and channel pad in one HBM pass.
    x_hwc = jnp.transpose(x_nchw[0].astype(jnp.float32), (1, 2, 0))          # (H, W, C)
    x_hwc = jnp.pad(x_hwc, ((pad, pad), (pad, pad), (0, C_pad - C)))         # (Hp, Wp, C_pad)
    w_hwc = jnp.transpose(weight_oihw[:, 0, :, :].astype(jnp.float32),
                          (1, 2, 0))                                         # (K, K, C)
    w_hwc = jnp.pad(w_hwc, ((0, 0), (0, 0), (0, C_pad - C)))                 # (K, K, C_pad)
    gamma_p = jnp.pad(gamma.astype(jnp.float32), (0, C_pad - C),
                      constant_values=1.0).reshape(1, C_pad)
    beta_p = jnp.pad(beta.astype(jnp.float32),
                     (0, C_pad - C)).reshape(1, C_pad)

    kern = functools.partial(_dwconv_bn_kernel, H, W, K, eps)
    out_hwc = pl.pallas_call(
        kern,
        out_shape=jax.ShapeDtypeStruct((H, W, C_pad), jnp.float32),
        grid=(num_blocks,),
        in_specs=[
            pl.BlockSpec((Hp, Wp, c_blk), lambda c: (0, 0, c)),
            pl.BlockSpec((K, K, c_blk), lambda c: (0, 0, c)),
            pl.BlockSpec((1, c_blk), lambda c: (0, c)),
            pl.BlockSpec((1, c_blk), lambda c: (0, c)),
        ],
        out_specs=pl.BlockSpec((H, W, c_blk), lambda c: (0, 0, c)),
        compiler_params=pltpu.CompilerParams(
            dimension_semantics=("parallel",)),   # v7x: shards channel steps over 2 TCs
    )(x_hwc, w_hwc, gamma_p, beta_p)

    # Drop padded channels; HWC -> NCHW.
    # TODO(synk): if the surrounding model is channels-last, skip this transpose round trip.
    out_hwc = out_hwc[:, :, :C]
    return jnp.transpose(out_hwc, (2, 0, 1))[None]


def _reference(x_nchw, weight_oihw, gamma, beta, eps=1e-5):
    """Pure-JAX reference (conv primitive + training-mode BN)."""
    C = x_nchw.shape[1]
    pad = (weight_oihw.shape[-1] - 1) // 2
    y = jax.lax.conv_general_dilated(
        x_nchw, weight_oihw,
        window_strides=(1, 1), padding=((pad, pad), (pad, pad)),
        dimension_numbers=("NCHW", "OIHW", "NCHW"),
        feature_group_count=C)
    mean = jnp.mean(y, axis=(0, 2, 3), keepdims=True)
    var = jnp.mean((y - mean) ** 2, axis=(0, 2, 3), keepdims=True)
    g = gamma.reshape(1, -1, 1, 1)
    b = beta.reshape(1, -1, 1, 1)
    return (y - mean) * jax.lax.rsqrt(var + eps) * g + b


if __name__ == "__main__":
    # Shapes implied by the module: x311 = (1, 1392, 7, 7), depthwise 5x5 conv, pad 2.
    N, C, H, W, K = 1, 1392, 7, 7, 5

    key = jax.random.PRNGKey(0)
    kx, kw, kg, kb = jax.random.split(key, 4)

    x = jax.random.normal(kx, (N, C, H, W), dtype=jnp.float32)
    # Conv weight: (out=C, in/groups=1, K, K).
    weight = 0.1 * jax.random.normal(kw, (C, 1, K, K), dtype=jnp.float32)
    # BN affine params (exercise the affine path with non-trivial values).
    gamma = 1.0 + 0.1 * jax.random.normal(kg, (C,), dtype=jnp.float32)
    beta = 0.1 * jax.random.normal(kb, (C,), dtype=jnp.float32)

    out = jax.block_until_ready(dwconv_bn(x, weight, gamma, beta))
    ref = jax.block_until_ready(_reference(x, weight, gamma, beta))

    assert out.shape == (N, C, H, W)
    err = float(jnp.max(jnp.abs(out - ref)))
    assert err < 1e-3, f"mismatch vs JAX reference: {err}"

    print("KERNEL_OK")
</pallas_src>

<mosaic_0001>
module attributes {stable_mosaic.version = 11 : i64} {
  func.func @_dwconv_bn_kernel(%arg0: i32, %arg1: memref<11x11x128xf32, #tpu.memory_space<vmem>>, %arg2: memref<5x5x128xf32, #tpu.memory_space<vmem>>, %arg3: memref<1x128xf32, #tpu.memory_space<vmem>>, %arg4: memref<1x128xf32, #tpu.memory_space<vmem>>, %arg5: memref<7x7x128xf32, #tpu.memory_space<vmem>>) attributes {dimension_semantics = [#tpu.dimension_semantics<parallel>], iteration_bounds = array<i64: 11>, scalar_prefetch = 0 : i64, scratch_operands = 0 : i64, tpu.core_type = #tpu.core_type<tc>, window_params = [{transform_indices = @transform_0, window_bounds = array<i64: 11, 11, 128>}, {transform_indices = @transform_1, window_bounds = array<i64: 5, 5, 128>}, {transform_indices = @transform_2, window_bounds = array<i64: 1, 128>}, {transform_indices = @transform_3, window_bounds = array<i64: 1, 128>}, {transform_indices = @transform_4, window_bounds = array<i64: 7, 7, 128>}]} {
    %c0 = arith.constant 0 : index
    %c0_0 = arith.constant 0 : index
    %c0_1 = arith.constant 0 : index
    %0 = vector.load %arg1[%c0, %c0_0, %c0_1] : memref<11x11x128xf32, #tpu.memory_space<vmem>>, vector<11x11x128xf32>
    %c0_2 = arith.constant 0 : index
    %c0_3 = arith.constant 0 : index
    %c0_4 = arith.constant 0 : index
    %1 = vector.load %arg2[%c0_2, %c0_3, %c0_4] : memref<5x5x128xf32, #tpu.memory_space<vmem>>, vector<5x5x128xf32>
    %cst = arith.constant 0.000000e+00 : f32
    %2 = vector.broadcast %cst : f32 to vector<7x7x128xf32>
    %3 = vector.extract_strided_slice %0 {offsets = [0, 0, 0], sizes = [11, 7, 128], strides = [1, 1, 1]} : vector<11x11x128xf32> to vector<11x7x128xf32>
    %4 = vector.extract_strided_slice %3 {offsets = [0, 0, 0], sizes = [7, 7, 128], strides = [1, 1, 1]} : vector<11x7x128xf32> to vector<7x7x128xf32>
    %5 = vector.extract_strided_slice %1 {offsets = [0, 0, 0], sizes = [1, 1, 128], strides = [1, 1, 1]} : vector<5x5x128xf32> to vector<1x1x128xf32>
    %6 = vector.shape_cast %5 : vector<1x1x128xf32> to vector<128xf32>
    %7 = vector.shape_cast %6 : vector<128xf32> to vector<1x1x128xf32>
    %8 = vector.broadcast %7 : vector<1x1x128xf32> to vector<7x7x128xf32>
    %9 = arith.mulf %4, %8 : vector<7x7x128xf32>
    %10 = arith.addf %2, %9 : vector<7x7x128xf32>
    %11 = vector.extract_strided_slice %3 {offsets = [1, 0, 0], sizes = [7, 7, 128], strides = [1, 1, 1]} : vector<11x7x128xf32> to vector<7x7x128xf32>
    %12 = vector.extract_strided_slice %1 {offsets = [1, 0, 0], sizes = [1, 1, 128], strides = [1, 1, 1]} : vector<5x5x128xf32> to vector<1x1x128xf32>
    %13 = vector.shape_cast %12 : vector<1x1x128xf32> to vector<128xf32>
    %14 = vector.shape_cast %13 : vector<128xf32> to vector<1x1x128xf32>
    %15 = vector.broadcast %14 : vector<1x1x128xf32> to vector<7x7x128xf32>
    %16 = arith.mulf %11, %15 : vector<7x7x128xf32>
    %17 = arith.addf %10, %16 : vector<7x7x128xf32>
    %18 = vector.extract_strided_slice %3 {offsets = [2, 0, 0], sizes = [7, 7, 128], strides = [1, 1, 1]} : vector<11x7x128xf32> to vector<7x7x128xf32>
    %19 = vector.extract_strided_slice %1 {offsets = [2, 0, 0], sizes = [1, 1, 128], strides = [1, 1, 1]} : vector<5x5x128xf32> to vector<1x1x128xf32>
    %20 = vector.shape_cast %19 : vector<1x1x128xf32> to vector<128xf32>
    %21 = vector.shape_cast %20 : vector<128xf32> to vector<1x1x128xf32>
    %22 = vector.broadcast %21 : vector<1x1x128xf32> to vector<7x7x128xf32>
    %23 = arith.mulf %18, %22 : vector<7x7x128xf32>
    %24 = arith.addf %17, %23 : vector<7x7x128xf32>
    %25 = vector.extract_strided_slice %3 {offsets = [3, 0, 0], sizes = [7, 7, 128], strides = [1, 1, 1]} : vector<11x7x128xf32> to vector<7x7x128xf32>
    %26 = vector.extract_strided_slice %1 {offsets = [3, 0, 0], sizes = [1, 1, 128], strides = [1, 1, 1]} : vector<5x5x128xf32> to vector<1x1x128xf32>
    %27 = vector.shape_cast %26 : vector<1x1x128xf32> to vector<128xf32>
    %28 = vector.shape_cast %27 : vector<128xf32> to vector<1x1x128xf32>
    %29 = vector.broadcast %28 : vector<1x1x128xf32> to vector<7x7x128xf32>
    %30 = arith.mulf %25, %29 : vector<7x7x128xf32>
    %31 = arith.addf %24, %30 : vector<7x7x128xf32>
    %32 = vector.extract_strided_slice %3 {offsets = [4, 0, 0], sizes = [7, 7, 128], strides = [1, 1, 1]} : vector<11x7x128xf32> to vector<7x7x128xf32>
    %33 = vector.extract_strided_slice %1 {offsets = [4, 0, 0], sizes = [1, 1, 128], strides = [1, 1, 1]} : vector<5x5x128xf32> to vector<1x1x128xf32>
    %34 = vector.shape_cast %33 : vector<1x1x128xf32> to vector<128xf32>
    %35 = vector.shape_cast %34 : vector<128xf32> to vector<1x1x128xf32>
    %36 = vector.broadcast %35 : vector<1x1x128xf32> to vector<7x7x128xf32>
    %37 = arith.mulf %32, %36 : vector<7x7x128xf32>
    %38 = arith.addf %31, %37 : vector<7x7x128xf32>
    %39 = vector.extract_strided_slice %0 {offsets = [0, 1, 0], sizes = [11, 7, 128], strides = [1, 1, 1]} : vector<11x11x128xf32> to vector<11x7x128xf32>
    %40 = vector.extract_strided_slice %39 {offsets = [0, 0, 0], sizes = [7, 7, 128], strides = [1, 1, 1]} : vector<11x7x128xf32> to vector<7x7x128xf32>
    %41 = vector.extract_strided_slice %1 {offsets = [0, 1, 0], sizes = [1, 1, 128], strides = [1, 1, 1]} : vector<5x5x128xf32> to vector<1x1x128xf32>
    %42 = vector.shape_cast %41 : vector<1x1x128xf32> to vector<128xf32>
    %43 = vector.shape_cast %42 : vector<128xf32> to vector<1x1x128xf32>
    %44 = vector.broadcast %43 : vector<1x1x128xf32> to vector<7x7x128xf32>
    %45 = arith.mulf %40, %44 : vector<7x7x128xf32>
    %46 = arith.addf %38, %45 : vector<7x7x128xf32>
    %47 = vector.extract_strided_slice %39 {offsets = [1, 0, 0], sizes = [7, 7, 128], strides = [1, 1, 1]} : vector<11x7x128xf32> to vector<7x7x128xf32>
    %48 = vector.extract_strided_slice %1 {offsets = [1, 1, 0], sizes = [1, 1, 128], strides = [1, 1, 1]} : vector<5x5x128xf32> to vector<1x1x128xf32>
    %49 = vector.shape_cast %48 : vector<1x1x128xf32> to vector<128xf32>
    %50 = vector.shape_cast %49 : vector<128xf32> to vector<1x1x128xf32>
    %51 = vector.broadcast %50 : vector<1x1x128xf32> to vector<7x7x128xf32>
    %52 = arith.mulf %47, %51 : vector<7x7x128xf32>
    %53 = arith.addf %46, %52 : vector<7x7x128xf32>
    %54 = vector.extract_strided_slice %39 {offsets = [2, 0, 0], sizes = [7, 7, 128], strides = [1, 1, 1]} : vector<11x7x128xf32> to vector<7x7x128xf32>
    %55 = vector.extract_strided_slice %1 {offsets = [2, 1, 0], sizes = [1, 1, 128], strides = [1, 1, 1]} : vector<5x5x128xf32> to vector<1x1x128xf32>
    %56 = vector.shape_cast %55 : vector<1x1x128xf32> to vector<128xf32>
    %57 = vector.shape_cast %56 : vector<128xf32> to vector<1x1x128xf32>
    %58 = vector.broadcast %57 : vector<1x1x128xf32> to vector<7x7x128xf32>
    %59 = arith.mulf %54, %58 : vector<7x7x128xf32>
    %60 = arith.addf %53, %59 : vector<7x7x128xf32>
    %61 = vector.extract_strided_slice %39 {offsets = [3, 0, 0], sizes = [7, 7, 128], strides = [1, 1, 1]} : vector<11x7x128xf32> to vector<7x7x128xf32>
    %62 = vector.extract_strided_slice %1 {offsets = [3, 1, 0], sizes = [1, 1, 128], strides = [1, 1, 1]} : vector<5x5x128xf32> to vector<1x1x128xf32>
    %63 = vector.shape_cast %62 : vector<1x1x128xf32> to vector<128xf32>
    %64 = vector.shape_cast %63 : vector<128xf32> to vector<1x1x128xf32>
    %65 = vector.broadcast %64 : vector<1x1x128xf32> to vector<7x7x128xf32>
    %66 = arith.mulf %61, %65 : vector<7x7x128xf32>
    %67 = arith.addf %60, %66 : vector<7x7x128xf32>
    %68 = vector.extract_strided_slice %39 {offsets = [4, 0, 0], sizes = [7, 7, 128], strides = [1, 1, 1]} : vector<11x7x128xf32> to vector<7x7x128xf32>
    %69 = vector.extract_strided_slice %1 {offsets = [4, 1, 0], sizes = [1, 1, 128], strides = [1, 1, 1]} : vector<5x5x128xf32> to vector<1x1x128xf32>
    %70 = vector.shape_cast %69 : vector<1x1x128xf32> to vector<128xf32>
    %71 = vector.shape_cast %70 : vector<128xf32> to vector<1x1x128xf32>
    %72 = vector.broadcast %71 : vector<1x1x128xf32> to vector<7x7x128xf32>
    %73 = arith.mulf %68, %72 : vector<7x7x128xf32>
    %74 = arith.addf %67, %73 : vector<7x7x128xf32>
    %75 = vector.extract_strided_slice %0 {offsets = [0, 2, 0], sizes = [11, 7, 128], strides = [1, 1, 1]} : vector<11x11x128xf32> to vector<11x7x128xf32>
    %76 = vector.extract_strided_slice %75 {offsets = [0, 0, 0], sizes = [7, 7, 128], strides = [1, 1, 1]} : vector<11x7x128xf32> to vector<7x7x128xf32>
    %77 = vector.extract_strided_slice %1 {offsets = [0, 2, 0], sizes = [1, 1, 128], strides = [1, 1, 1]} : vector<5x5x128xf32> to vector<1x1x128xf32>
    %78 = vector.shape_cast %77 : vector<1x1x128xf32> to vector<128xf32>
    %79 = vector.shape_cast %78 : vector<128xf32> to vector<1x1x128xf32>
    %80 = vector.broadcast %79 : vector<1x1x128xf32> to vector<7x7x128xf32>
    %81 = arith.mulf %76, %80 : vector<7x7x128xf32>
    %82 = arith.addf %74, %81 : vector<7x7x128xf32>
    %83 = vector.extract_strided_slice %75 {offsets = [1, 0, 0], sizes = [7, 7, 128], strides = [1, 1, 1]} : vector<11x7x128xf32> to vector<7x7x128xf32>
    %84 = vector.extract_strided_slice %1 {offsets = [1, 2, 0], sizes = [1, 1, 128], strides = [1, 1, 1]} : vector<5x5x128xf32> to vector<1x1x128xf32>
    %85 = vector.shape_cast %84 : vector<1x1x128xf32> to vector<128xf32>
    %86 = vector.shape_cast %85 : vector<128xf32> to vector<1x1x128xf32>
    %87 = vector.broadcast %86 : vector<1x1x128xf32> to vector<7x7x128xf32>
    %88 = arith.mulf %83, %87 : vector<7x7x128xf32>
    %89 = arith.addf %82, %88 : vector<7x7x128xf32>
    %90 = vector.extract_strided_slice %75 {offsets = [2, 0, 0], sizes = [7, 7, 128], strides = [1, 1, 1]} : vector<11x7x128xf32> to vector<7x7x128xf32>
    %91 = vector.extract_strided_slice %1 {offsets = [2, 2, 0], sizes = [1, 1, 128], strides = [1, 1, 1]} : vector<5x5x128xf32> to vector<1x1x128xf32>
    %92 = vector.shape_cast %91 : vector<1x1x128xf32> to vector<128xf32>
    %93 = vector.shape_cast %92 : vector<128xf32> to vector<1x1x128xf32>
    %94 = vector.broadcast %93 : vector<1x1x128xf32> to vector<7x7x128xf32>
    %95 = arith.mulf %90, %94 : vector<7x7x128xf32>
    %96 = arith.addf %89, %95 : vector<7x7x128xf32>
    %97 = vector.extract_strided_slice %75 {offsets = [3, 0, 0], sizes = [7, 7, 128], strides = [1, 1, 1]} : vector<11x7x128xf32> to vector<7x7x128xf32>
    %98 = vector.extract_strided_slice %1 {offsets = [3, 2, 0], sizes = [1, 1, 128], strides = [1, 1, 1]} : vector<5x5x128xf32> to vector<1x1x128xf32>
    %99 = vector.shape_cast %98 : vector<1x1x128xf32> to vector<128xf32>
    %100 = vector.shape_cast %99 : vector<128xf32> to vector<1x1x128xf32>
    %101 = vector.broadcast %100 : vector<1x1x128xf32> to vector<7x7x128xf32>
    %102 = arith.mulf %97, %101 : vector<7x7x128xf32>
    %103 = arith.addf %96, %102 : vector<7x7x128xf32>
    %104 = vector.extract_strided_slice %75 {offsets = [4, 0, 0], sizes = [7, 7, 128], strides = [1, 1, 1]} : vector<11x7x128xf32> to vector<7x7x128xf32>
    %105 = vector.extract_strided_slice %1 {offsets = [4, 2, 0], sizes = [1, 1, 128], strides = [1, 1, 1]} : vector<5x5x128xf32> to vector<1x1x128xf32>
    %106 = vector.shape_cast %105 : vector<1x1x128xf32> to vector<128xf32>
    %107 = vector.shape_cast %106 : vector<128xf32> to vector<1x1x128xf32>
    %108 = vector.broadcast %107 : vector<1x1x128xf32> to vector<7x7x128xf32>
    %109 = arith.mulf %104, %108 : vector<7x7x128xf32>
    %110 = arith.addf %103, %109 : vector<7x7x128xf32>
    %111 = vector.extract_strided_slice %0 {offsets = [0, 3, 0], sizes = [11, 7, 128], strides = [1, 1, 1]} : vector<11x11x128xf32> to vector<11x7x128xf32>
    %112 = vector.extract_strided_slice %111 {offsets = [0, 0, 0], sizes = [7, 7, 128], strides = [1, 1, 1]} : vector<11x7x128xf32> to vector<7x7x128xf32>
    %113 = vector.extract_strided_slice %1 {offsets = [0, 3, 0], sizes = [1, 1, 128], strides = [1, 1, 1]} : vector<5x5x128xf32> to vector<1x1x128xf32>
    %114 = vector.shape_cast %113 : vector<1x1x128xf32> to vector<128xf32>
    %115 = vector.shape_cast %114 : vector<128xf32> to vector<1x1x128xf32>
    %116 = vector.broadcast %115 : vector<1x1x128xf32> to vector<7x7x128xf32>
    %117 = arith.mulf %112, %116 : vector<7x7x128xf32>
    %118 = arith.addf %110, %117 : vector<7x7x128xf32>
    %119 = vector.extract_strided_slice %111 {offsets = [1, 0, 0], sizes = [7, 7, 128], strides = [1, 1, 1]} : vector<11x7x128xf32> to vector<7x7x128xf32>
    %120 = vector.extract_strided_slice %1 {offsets = [1, 3, 0], sizes = [1, 1, 128], strides = [1, 1, 1]} : vector<5x5x128xf32> to vector<1x1x128xf32>
    %121 = vector.shape_cast %120 : vector<1x1x128xf32> to vector<128xf32>
    %122 = vector.shape_cast %121 : vector<128xf32> to vector<1x1x128xf32>
    %123 = vector.broadcast %122 : vector<1x1x128xf32> to vector<7x7x128xf32>
    %124 = arith.mulf %119, %123 : vector<7x7x128xf32>
    %125 = arith.addf %118, %124 : vector<7x7x128xf32>
    %126 = vector.extract_strided_slice %111 {offsets = [2, 0, 0], sizes = [7, 7, 128], strides = [1, 1, 1]} : vector<11x7x128xf32> to vector<7x7x128xf32>
    %127 = vector.extract_strided_slice %1 {offsets = [2, 3, 0], sizes = [1, 1, 128], strides = [1, 1, 1]} : vector<5x5x128xf32> to vector<1x1x128xf32>
    %128 = vector.shape_cast %127 : vector<1x1x128xf32> to vector<128xf32>
    %129 = vector.shape_cast %128 : vector<128xf32> to vector<1x1x128xf32>
    %130 = vector.broadcast %129 : vector<1x1x128xf32> to vector<7x7x128xf32>
    %131 = arith.mulf %126, %130 : vector<7x7x128xf32>
    %132 = arith.addf %125, %131 : vector<7x7x128xf32>
    %133 = vector.extract_strided_slice %111 {offsets = [3, 0, 0], sizes = [7, 7, 128], strides = [1, 1, 1]} : vector<11x7x128xf32> to vector<7x7x128xf32>
    %134 = vector.extract_strided_slice %1 {offsets = [3, 3, 0], sizes = [1, 1, 128], strides = [1, 1, 1]} : vector<5x5x128xf32> to vector<1x1x128xf32>
    %135 = vector.shape_cast %134 : vector<1x1x128xf32> to vector<128xf32>
    %136 = vector.shape_cast %135 : vector<128xf32> to vector<1x1x128xf32>
    %137 = vector.broadcast %136 : vector<1x1x128xf32> to vector<7x7x128xf32>
    %138 = arith.mulf %133, %137 : vector<7x7x128xf32>
    %139 = arith.addf %132, %138 : vector<7x7x128xf32>
    %140 = vector.extract_strided_slice %111 {offsets = [4, 0, 0], sizes = [7, 7, 128], strides = [1, 1, 1]} : vector<11x7x128xf32> to vector<7x7x128xf32>
    %141 = vector.extract_strided_slice %1 {offsets = [4, 3, 0], sizes = [1, 1, 128], strides = [1, 1, 1]} : vector<5x5x128xf32> to vector<1x1x128xf32>
    %142 = vector.shape_cast %141 : vector<1x1x128xf32> to vector<128xf32>
    %143 = vector.shape_cast %142 : vector<128xf32> to vector<1x1x128xf32>
    %144 = vector.broadcast %143 : vector<1x1x128xf32> to vector<7x7x128xf32>
    %145 = arith.mulf %140, %144 : vector<7x7x128xf32>
    %146 = arith.addf %139, %145 : vector<7x7x128xf32>
    %147 = vector.extract_strided_slice %0 {offsets = [0, 4, 0], sizes = [11, 7, 128], strides = [1, 1, 1]} : vector<11x11x128xf32> to vector<11x7x128xf32>
    %148 = vector.extract_strided_slice %147 {offsets = [0, 0, 0], sizes = [7, 7, 128], strides = [1, 1, 1]} : vector<11x7x128xf32> to vector<7x7x128xf32>
    %149 = vector.extract_strided_slice %1 {offsets = [0, 4, 0], sizes = [1, 1, 128], strides = [1, 1, 1]} : vector<5x5x128xf32> to vector<1x1x128xf32>
    %150 = vector.shape_cast %149 : vector<1x1x128xf32> to vector<128xf32>
    %151 = vector.shape_cast %150 : vector<128xf32> to vector<1x1x128xf32>
    %152 = vector.broadcast %151 : vector<1x1x128xf32> to vector<7x7x128xf32>
    %153 = arith.mulf %148, %152 : vector<7x7x128xf32>
    %154 = arith.addf %146, %153 : vector<7x7x128xf32>
    %155 = vector.extract_strided_slice %147 {offsets = [1, 0, 0], sizes = [7, 7, 128], strides = [1, 1, 1]} : vector<11x7x128xf32> to vector<7x7x128xf32>
    %156 = vector.extract_strided_slice %1 {offsets = [1, 4, 0], sizes = [1, 1, 128], strides = [1, 1, 1]} : vector<5x5x128xf32> to vector<1x1x128xf32>
    %157 = vector.shape_cast %156 : vector<1x1x128xf32> to vector<128xf32>
    %158 = vector.shape_cast %157 : vector<128xf32> to vector<1x1x128xf32>
    %159 = vector.broadcast %158 : vector<1x1x128xf32> to vector<7x7x128xf32>
    %160 = arith.mulf %155, %159 : vector<7x7x128xf32>
    %161 = arith.addf %154, %160 : vector<7x7x128xf32>
    %162 = vector.extract_strided_slice %147 {offsets = [2, 0, 0], sizes = [7, 7, 128], strides = [1, 1, 1]} : vector<11x7x128xf32> to vector<7x7x128xf32>
    %163 = vector.extract_strided_slice %1 {offsets = [2, 4, 0], sizes = [1, 1, 128], strides = [1, 1, 1]} : vector<5x5x128xf32> to vector<1x1x128xf32>
    %164 = vector.shape_cast %163 : vector<1x1x128xf32> to vector<128xf32>
    %165 = vector.shape_cast %164 : vector<128xf32> to vector<1x1x128xf32>
    %166 = vector.broadcast %165 : vector<1x1x128xf32> to vector<7x7x128xf32>
    %167 = arith.mulf %162, %166 : vector<7x7x128xf32>
    %168 = arith.addf %161, %167 : vector<7x7x128xf32>
    %169 = vector.extract_strided_slice %147 {offsets = [3, 0, 0], sizes = [7, 7, 128], strides = [1, 1, 1]} : vector<11x7x128xf32> to vector<7x7x128xf32>
    %170 = vector.extract_strided_slice %1 {offsets = [3, 4, 0], sizes = [1, 1, 128], strides = [1, 1, 1]} : vector<5x5x128xf32> to vector<1x1x128xf32>
    %171 = vector.shape_cast %170 : vector<1x1x128xf32> to vector<128xf32>
    %172 = vector.shape_cast %171 : vector<128xf32> to vector<1x1x128xf32>
    %173 = vector.broadcast %172 : vector<1x1x128xf32> to vector<7x7x128xf32>
    %174 = arith.mulf %169, %173 : vector<7x7x128xf32>
    %175 = arith.addf %168, %174 : vector<7x7x128xf32>
    %176 = vector.extract_strided_slice %147 {offsets = [4, 0, 0], sizes = [7, 7, 128], strides = [1, 1, 1]} : vector<11x7x128xf32> to vector<7x7x128xf32>
    %177 = vector.extract_strided_slice %1 {offsets = [4, 4, 0], sizes = [1, 1, 128], strides = [1, 1, 1]} : vector<5x5x128xf32> to vector<1x1x128xf32>
    %178 = vector.shape_cast %177 : vector<1x1x128xf32> to vector<128xf32>
    %179 = vector.shape_cast %178 : vector<128xf32> to vector<1x1x128xf32>
    %180 = vector.broadcast %179 : vector<1x1x128xf32> to vector<7x7x128xf32>
    %181 = arith.mulf %176, %180 : vector<7x7x128xf32>
    %182 = arith.addf %175, %181 : vector<7x7x128xf32>
    %cst_5 = arith.constant dense<0.000000e+00> : vector<128xf32>
    %183 = vector.multi_reduction <add>, %182, %cst_5 [0, 1] : vector<7x7x128xf32> to vector<128xf32>
    %184 = vector.shape_cast %183 : vector<128xf32> to vector<1x1x128xf32>
    %185 = arith.mulf %182, %182 : vector<7x7x128xf32>
    %cst_6 = arith.constant dense<0.000000e+00> : vector<128xf32>
    %186 = vector.multi_reduction <add>, %185, %cst_6 [0, 1] : vector<7x7x128xf32> to vector<128xf32>
    %187 = vector.shape_cast %186 : vector<128xf32> to vector<1x1x128xf32>
    %cst_7 = arith.constant 0.0204081628 : f32
    %188 = vector.broadcast %cst_7 : f32 to vector<1x1x128xf32>
    %189 = arith.mulf %184, %188 : vector<1x1x128xf32>
    %cst_8 = arith.constant 0.0204081628 : f32
    %190 = vector.broadcast %cst_8 : f32 to vector<1x1x128xf32>
    %191 = arith.mulf %187, %190 : vector<1x1x128xf32>
    %192 = arith.mulf %189, %189 : vector<1x1x128xf32>
    %193 = arith.subf %191, %192 : vector<1x1x128xf32>
    %cst_9 = arith.constant 0.000000e+00 : f32
    %194 = vector.broadcast %cst_9 : f32 to vector<1x1x128xf32>
    %195 = arith.maximumf %193, %194 : vector<1x1x128xf32>
    %c0_10 = arith.constant 0 : index
    %c0_11 = arith.constant 0 : index
    %196 = vector.load %arg3[%c0_10, %c0_11] : memref<1x128xf32, #tpu.memory_space<vmem>>, vector<1x128xf32>
    %197 = vector.shape_cast %196 : vector<1x128xf32> to vector<128xf32>
    %cst_12 = arith.constant 9.99999974E-6 : f32
    %198 = vector.broadcast %cst_12 : f32 to vector<1x1x128xf32>
    %199 = arith.addf %195, %198 : vector<1x1x128xf32>
    %200 = math.rsqrt %199 : vector<1x1x128xf32>
    %201 = vector.shape_cast %197 : vector<128xf32> to vector<1x1x128xf32>
    %202 = arith.mulf %201, %200 : vector<1x1x128xf32>
    %c0_13 = arith.constant 0 : index
    %c0_14 = arith.constant 0 : index
    %203 = vector.load %arg4[%c0_13, %c0_14] : memref<1x128xf32, #tpu.memory_space<vmem>>, vector<1x128xf32>
    %204 = vector.shape_cast %203 : vector<1x128xf32> to vector<128xf32>
    %205 = arith.mulf %189, %202 : vector<1x1x128xf32>
    %206 = vector.shape_cast %204 : vector<128xf32> to vector<1x1x128xf32>
    %207 = arith.subf %206, %205 : vector<1x1x128xf32>
    %208 = vector.broadcast %202 : vector<1x1x128xf32> to vector<7x7x128xf32>
    %209 = arith.mulf %182, %208 : vector<7x7x128xf32>
    %210 = vector.broadcast %207 : vector<1x1x128xf32> to vector<7x7x128xf32>
    %211 = arith.addf %209, %210 : vector<7x7x128xf32>
    %c0_15 = arith.constant 0 : index
    %c0_16 = arith.constant 0 : index
    %c0_17 = arith.constant 0 : index
    %212 = vector.load %arg5[%c0_15, %c0_16, %c0_17] : memref<7x7x128xf32, #tpu.memory_space<vmem>>, vector<7x7x128xf32>
    tpu.vector_store %arg5[%c0_15, %c0_16, %c0_17], %211 {strides = array<i32>} : memref<7x7x128xf32, #tpu.memory_space<vmem>>, vector<7x7x128xf32>,
    return
  }
  func.func @transform_0(%arg0: i32) -> (i32, i32, i32) {
    %c0_i32 = arith.constant 0 : i32
    %c0_i32_0 = arith.constant 0 : i32
    %c0_i32_1 = arith.constant 0 : i32
    return %c0_i32, %c0_i32_0, %arg0 : i32, i32, i32
  }
  func.func @transform_1(%arg0: i32) -> (i32, i32, i32) {
    %c0_i32 = arith.constant 0 : i32
    %c0_i32_0 = arith.constant 0 : i32
    %c0_i32_1 = arith.constant 0 : i32
    return %c0_i32, %c0_i32_0, %arg0 : i32, i32, i32
  }
  func.func @transform_2(%arg0: i32) -> (i32, i32) {
    %c0_i32 = arith.constant 0 : i32
    %c0_i32_0 = arith.constant 0 : i32
    return %c0_i32, %arg0 : i32, i32
  }
  func.func @transform_3(%arg0: i32) -> (i32, i32) {
    %c0_i32 = arith.constant 0 : i32
    %c0_i32_0 = arith.constant 0 : i32
    return %c0_i32, %arg0 : i32, i32
  }
  func.func @transform_4(%arg0: i32) -> (i32, i32, i32) {
    %c0_i32 = arith.constant 0 : i32
    %c0_i32_0 = arith.constant 0 : i32
    %c0_i32_1 = arith.constant 0 : i32
    return %c0_i32, %c0_i32_0, %arg0 : i32, i32, i32
  }
}

</mosaic_0001>

<bundles_post_ra>
// kernel: tpu_custom_call.1
= control target key start
LH: loop header
LB: loop body
LE: loop exit
PB: predicated region body
PF: predicated region fallthrough
CT: control target
= control target key end

     0   :  { %s3289_s0 = inlined_call_operand.hbm [shape: f32[11,11,1408], index: 0, kind: input, shape index: {}]   ;;  %s3290_s1 = inlined_call_operand.hbm [shape: f32[5,5,1408], index: 1, kind: input, shape index: {}]   ;;  %s3291_s2 = inlined_call_operand.hbm [shape: f32[1,1408], index: 2, kind: input, shape index: {}]   ;;  %s3292_s3 = inlined_call_operand.hbm [shape: f32[1,1408], index: 3, kind: input, shape index: {}]   ;;  %s3293_s4 = inlined_call_operand.hbm [shape: f32[7,7,1408], index: 4, kind: output, shape index: {}]  }
   0x1   :  { %3302 = sst [smem:[#allocation19_spill]] %s3290_s1 }
   0x2   :  { %9 = vsyncpa [#allocation3], 0 }
   0x3   :  { %11 = vsyncpa [#allocation3 + $0x1], 0 }
   0x4   :  { %12 = vsyncpa [#allocation6], 0 }
   0x5   :  { %14 = vsyncpa [#allocation6 + $0x1], 0 }
   0x6   :  { %15 = vsyncpa [#allocation9], 0 }
   0x7   :  { %17 = vsyncpa [#allocation9 + $0x1], 0 }
   0x8   :  { %18 = vsyncpa [#allocation4], 0 }
   0x9   :  { %20 = vsyncpa [#allocation4 + $0x1], 0  ;;  %s2206_s15 = smov 0   ;;  %s2208_s16 = smov 0  }
   0xa   :  { %s2210_s17 = smov 0   ;;  %s2212_s18 = smov 0  }
   0xb LB: > { %3303 = sst [smem:[#allocation15_spill]] %s2164_s17  ;;  %s2227_s19 = sadd.s32 4294967295, %s2168_s18   ;;  %s2168_s18 = sphi %s2212_s18, %s3321_s18   ;;  %s2164_s17 = sphi %s2210_s17, %s3323_s17   ;;  %s2160_s16 = sphi %s2208_s16, %s3325_s16   ;;  %s2156_s15 = sphi %s2206_s15, %s3324_s15  }
   0xc   : > { %s1876_s20 = sadd.s32 4294967294, %s2168_s18   ;;  %s2231_s21 = sadd.s32 1, %s2168_s18  }
   0xd   : > { %3304 = sst [smem:[#allocation16_spill]] %s2231_s21  ;;  %s33_s22 = sadd.s32 1, %s2164_s17 }
   0xe   : > { %s30_s23 = ssub.s32 %s2168_s18, %s2231_s21  ;;  %p40_p0 = scmp.ne.s32.totalorder %s2164_s17, %s2160_s16 }
   0xf   : > { %p31_p1 = scmp.eq.s32.totalorder %s30_s23, 0  ;;  %p41_p2 = scmp.eq.s32.totalorder %s2168_s18, 0 }
  0x10   : > { %p46_p3 = scmp.ne.s32.totalorder %s2160_s16, %s2156_s15  ;;  %p47_p4 = scmp.eq.s32.totalorder %s2227_s19, 0 }
  0x11   : > { %s2243_s24 = scalar_select %p31_p1, %s2164_s17, %s33_s22  }
  0x12   : > { %p42_p5 = por %p41_p2, %p40_p0  ;;  %p2245_p6 = por %p47_p4, %p46_p3 }
  0x13   : > { %3305 = sst [smem:[#allocation17_spill]] %s2243_s24  ;;  %p148_p7 = scmp.eq.s32.totalorder %s2227_s19, 10 }
  0x14   : > { %s3306_s25 = scalar_select %p2245_p6, 1, 0 }
  0x15   : > { %p154_p8 = scmp.eq.s32.totalorder %s1876_s20, 10  ;;  %p1919_p9 = scmp.lt.s32.totalorder %s2168_s18, 11 }
  0x16   : > { %p2251_p10 = por %p148_p7, %p40_p0  ;;  %s2260_s28 = sand.u32 1, %s2164_s17  }
  0x17   : > { %p2255_p11 = por %p154_p8, %p46_p3  ;;  %s1879_s29 = sshll.u32 %s2168_s18, 7 }
  0x18   : > { %s3307_s26 = scalar_select %p2251_p10, 1, 0 }
  0x19   : > { %s3308_s27 = scalar_select %p2255_p11, 1, 0 }
  0x1a   : > { %p2263_p12 = pnand %p1919_p9, %p42_p5  ;;  %s194_s5 = sand.u32 1, %s2168_s18  }
  0x1b   : > { %3309 = sst [smem:[#allocation18_spill]] %s3308_s27  ;;  %s1888_s6 = smul.u32 40, %s2260_s28 }
  0x1c   : > { %s3311_s1 = sld [smem:[#allocation19_spill]]  ;;  %p1883_p13 = scmp.ge.s32.totalorder %s2168_s18, 1 }
  0x1d   : > { %p246_p0 = scmp.lt.s32.totalorder %s2168_s18, 12  ;;  %s198_s10 = scalar_lea.vmem [#allocation5], %s1888_s6 }
  0x1e   : > { %s204_s11 = sshll.u32 %s198_s10, 4  ;;  %s2284_s13 = scalar_lea.sflag [#allocation6], %s194_s5  ;;  %s2278_s11 = int_to_ptr.vmem [resolvable:$true] %s204_s11 }
  0x1f   : > { %p2280_p1 = pnand %p1883_p13, %p246_p0  ;;  %p2290_p3 = pneg %p2263_p12 }
  0x21   : > { %s3312_s12 = scalar_select %p2280_p1, 1, 0 }
  0x22   : > { %s2274_s9 = scalar_lea.hbm %s3311_s1, %s1879_s29  ;;  %s1989_s6 = scalar_lea.hbm %s3311_s1, 7040 }
  0x23   : > { %s1984_s14 = scalar_lea.hbm %s2274_s9, 640  ;;  %p1990_p7 = scmp.lt.s32.totalorder %s2274_s9, %s3311_s1 }
  0x24   : > { %p1985_p2 = scmp.ne.s32.totalorder %s2274_s9, %s1984_s14  ;;  %p1991_p8 = scmp.lt.s32.totalorder %s1989_s6, %s1984_s14 }
  0x26   : > { %p1987_p4 = pnand %p2290_p3, %p1985_p2  ;;  %p1992_p9 = por %p1991_p8, %p1990_p7 }
  0x28   : > { %p1988_p5 = pneg %p1987_p4 }
  0x2a   : > { %p1993_p13 = pnand %p1992_p9, %p1988_p5 }
  0x2c   : > { %1996 = shalt.err (!%p1993_p13)
}
  0x2d   : > { %s1997_s5 = scalar_lea.vmem %s2278_s11, 640  ;;  %s2170_s10 = smov [#allocation5]  }
  0x2e   : > { %p1998_p0 = scmp.ne.s32.totalorder %s2278_s11, %s1997_s5  ;;  %s2002_s22 = sshll.u32 %s2170_s10, 4  ;;  %s2003_s22 = int_to_ptr.vmem [resolvable:$false] %s2002_s22 }
  0x2f   : > { %s2004_s23 = scalar_lea.vmem %s2003_s22, 1280  ;;  %p2005_p11 = scmp.lt.s32.totalorder %s2278_s11, %s2003_s22 }
  0x30   : > { %p2000_p2 = pnand %p1998_p0, %p2290_p3  ;;  %p2006_p10 = scmp.lt.s32.totalorder %s2004_s23, %s1997_s5 }
  0x32   : > { %p2001_p4 = pneg %p2000_p2  ;;  %p2007_p6 = por %p2006_p10, %p2005_p11 }
  0x34   : > { %p2008_p1 = pnand %p2007_p6, %p2001_p4 }
  0x36   : > { %2011 = shalt.err (!%p2008_p1)
}
  0x37   : > { %s3300_s14 = smov 1408   ;;  %s2172_s6 = smov 128  }
  0x38   : > { %s2173_s7 = smov 8   ;;  %s1887_s8 = smul.u32 176, %s2260_s28 }
  0x39   : > { %1908 = dma.hbm_to_vmem [thread:$0]  (!%p2263_p12), %s2274_s9, 640, %s2278_s11, %s2284_s13, %s3300_s14, %s2172_s6, %s2173_s7  }
  0x3a   : > { %s2322_s22 = scalar_lea.hbm %s3289_s0, %s1879_s29  ;;  %s3301_s23 = sshll.u32 %s2168_s18, 4 }
  0x3b   : > { %s2330_s17 = scalar_lea.hbm %s3291_s2, %s3301_s23  ;;  %s178_s21 = scalar_lea.vmem [#allocation2], %s1887_s8 }
  0x3c   : > { %s184_s27 = sshll.u32 %s178_s21, 4  ;;  %s217_s9 = scalar_lea.vmem [#allocation7], %s2260_s28  ;;  %s2333_s27 = int_to_ptr.vmem [resolvable:$true] %s184_s27 }
  0x3d   : > { %s224_s11 = sshll.u32 %s217_s9, 4  ;;  %s175_s29 = scalar_lea.sflag [#allocation3], %s2260_s28  ;;  %s2335_s11 = int_to_ptr.vmem [resolvable:$true] %s224_s11 }
  0x3e   : > { %s2012_s5 = scalar_lea.hbm %s2322_s22, 2816  ;;  %s2017_s1 = scalar_lea.hbm %s3289_s0, 30976 }
  0x3f   : > { %p2013_p6 = scmp.ne.s32.totalorder %s2322_s22, %s2012_s5  ;;  %p2018_p1 = scmp.lt.s32.totalorder %s2322_s22, %s3289_s0 }
  0x40   : > { %p2019_p5 = scmp.lt.s32.totalorder %s2017_s1, %s2012_s5 }
  0x41   : > { %p2015_p10 = pnand %p2013_p6, %p2290_p3 }
  0x42   : > { %p2020_p7 = por %p2019_p5, %p2018_p1 }
  0x43   : > { %p2016_p11 = pneg %p2015_p10 }
  0x45   : > { %p2021_p8 = pnand %p2020_p7, %p2016_p11 }
  0x47   : > { %2024 = shalt.err (!%p2021_p8)
}
  0x48   : > { %s2025_s21 = scalar_lea.vmem %s2333_s27, 2816  ;;  %s2174_s8 = smov [#allocation2]  }
  0x49   : > { %p2026_p9 = scmp.ne.s32.totalorder %s2333_s27, %s2025_s21  ;;  %s2030_s14 = sshll.u32 %s2174_s8, 4  ;;  %s2031_s14 = int_to_ptr.vmem [resolvable:$false] %s2030_s14 }
  0x4a   : > { %s2032_s9 = scalar_lea.vmem %s2031_s14, 5632  ;;  %p2033_p2 = scmp.lt.s32.totalorder %s2333_s27, %s2031_s14 }
  0x4b   : > { %p2028_p13 = pnand %p2026_p9, %p2290_p3  ;;  %p2034_p4 = scmp.lt.s32.totalorder %s2032_s9, %s2025_s21 }
  0x4d   : > { %p2029_p0 = pneg %p2028_p13  ;;  %p2035_p6 = por %p2034_p4, %p2033_p2 }
  0x4f   : > { %p2036_p10 = pnand %p2035_p6, %p2029_p0 }
  0x51   : > { %2039 = shalt.err (!%p2036_p10)
}
  0x52   : > { %s3314_s23 = smov 1408   ;;  %s2040_s5 = scalar_lea.hbm %s2330_s17, 16 }
  0x53   : > { %1905 = dma.hbm_to_vmem [thread:$0]  (!%p2263_p12), %s2322_s22, 2816, %s2333_s27, %s175_s29, %s3314_s23, %s2172_s6, %s2173_s7  }
  0x54   : > { %p2041_p11 = scmp.ne.s32.totalorder %s2330_s17, %s2040_s5  ;;  %s2045_s24 = scalar_lea.hbm %s3291_s2, 176 }
  0x55   : > { %p2046_p7 = scmp.lt.s32.totalorder %s2330_s17, %s3291_s2  ;;  %p2047_p8 = scmp.lt.s32.totalorder %s2045_s24, %s2040_s5 }
  0x56   : > { %p2043_p1 = pnand %p2041_p11, %p2290_p3 }
  0x57   : > { %p2048_p9 = por %p2047_p8, %p2046_p7 }
  0x58   : > { %p2044_p5 = pneg %p2043_p1 }
  0x5a   : > { %p2049_p13 = pnand %p2048_p9, %p2044_p5 }
  0x5c   : > { %2052 = shalt.err (!%p2049_p13)
}
  0x5d   : > { %s2053_s27 = scalar_lea.vmem %s2335_s11, 16  ;;  %s2175_s6 = smov [#allocation7]  }
  0x5e   : > { %p2054_p0 = scmp.ne.s32.totalorder %s2335_s11, %s2053_s27  ;;  %s2058_s7 = sshll.u32 %s2175_s6, 4  ;;  %s2059_s7 = int_to_ptr.vmem [resolvable:$false] %s2058_s7 }
  0x5f   : > { %s2060_s22 = scalar_lea.vmem %s2059_s7, 32  ;;  %p2061_p6 = scmp.lt.s32.totalorder %s2335_s11, %s2059_s7 }
  0x60   : > { %p2056_p2 = pnand %p2054_p0, %p2290_p3  ;;  %p2062_p10 = scmp.lt.s32.totalorder %s2060_s22, %s2053_s27 }
  0x62   : > { %p2057_p4 = pneg %p2056_p2  ;;  %p2063_p11 = por %p2062_p10, %p2061_p6 }
  0x64   : > { %p2064_p1 = pnand %p2063_p11, %p2057_p4 }
  0x66   : > { %2067 = shalt.err (!%p2064_p1)
}
  0x67   : > { %1911 = dma.hbm_to_vmem [thread:$0]  (!%p2263_p12), %s2330_s17, 16, %s2335_s11, %s2284_s13  }
  0x68   : > { %s3315_s29 = sshll.u32 %s2168_s18, 4  ;;  %s234_s5 = scalar_lea.vmem [#allocation8], %s2260_s28 }
  0x69   : > { %s2387_s23 = scalar_lea.hbm %s3292_s3, %s3315_s29  ;;  %s241_s10 = sshll.u32 %s234_s5, 4  ;;  %s242_s10 = int_to_ptr.vmem [resolvable:$true] %s241_s10 }
  0x6a   : > { %s232_s1 = scalar_lea.sflag [#allocation9], %s2260_s28  ;;  %s2068_s24 = scalar_lea.hbm %s2387_s23, 16 }
  0x6b   : > { %p2069_p5 = scmp.ne.s32.totalorder %s2387_s23, %s2068_s24  ;;  %s2073_s13 = scalar_lea.hbm %s3292_s3, 176 }
  0x6c   : > { %p2074_p9 = scmp.lt.s32.totalorder %s2387_s23, %s3292_s3  ;;  %p2075_p13 = scmp.lt.s32.totalorder %s2073_s13, %s2068_s24 }
  0x6d   : > { %p2071_p7 = pnand %p2069_p5, %p2290_p3 }
  0x6e   : > { %p2076_p0 = por %p2075_p13, %p2074_p9 }
  0x6f   : > { %p2072_p8 = pneg %p2071_p7 }
  0x71   : > { %p2077_p2 = pnand %p2076_p0, %p2072_p8 }
  0x73   : > { %2080 = shalt.err (!%p2077_p2)
}
  0x74   : > { %s2081_s27 = scalar_lea.vmem %s242_s10, 16  ;;  %s2176_s28 = smov [#allocation8]  }
  0x75   : > { %p2082_p4 = scmp.ne.s32.totalorder %s242_s10, %s2081_s27  ;;  %s2086_s6 = sshll.u32 %s2176_s28, 4  ;;  %s2087_s6 = int_to_ptr.vmem [resolvable:$false] %s2086_s6 }
  0x76   : > { %s2088_s7 = scalar_lea.vmem %s2087_s6, 32  ;;  %p2089_p11 = scmp.lt.s32.totalorder %s242_s10, %s2087_s6 }
  0x77   : > { %p2084_p6 = pnand %p2082_p4, %p2290_p3  ;;  %p2090_p1 = scmp.lt.s32.totalorder %s2088_s7, %s2081_s27 }
  0x79   : > { %p2085_p10 = pneg %p2084_p6  ;;  %p2091_p5 = por %p2090_p1, %p2089_p11 }
  0x7b   : > { %p2092_p7 = pnand %p2091_p5, %p2085_p10 }
  0x7d   : > { %2095 = shalt.err (!%p2092_p7)
}
  0x7e   : > { %1914 = dma.hbm_to_vmem [thread:$0]  (!%p2263_p12), %s2387_s23, 16, %s242_s10, %s232_s1  }
  0x7f   : > { %p3316_p8 = scmp.ne.s32.totalorder %s3312_s12, 0 }
  0x80   : > { %s2410_s20 = sand.u32 (!%p3316_p8), 1, %s2160_s16   ;;  %p3317_p3 = scmp.ne.s32.totalorder (!%p3316_p8), %s3306_s25, 0 }
  0x81   : > { %250 = sbr.rel (%p3316_p8) target bundleno = 433 (0x1b1), region = 36  ;;  %s253_s29 = scalar_lea.sflag (!%p3316_p8), [#allocation3], %s2410_s20 }
  0x82   : > { %s1889_s22 = smul.u32 (!%p3316_p8), 176, %s2410_s20 }
  0x84   : > { %s2414_s14 = scalar_lea.vmem (!%p3316_p8), [#allocation2], %s1889_s22 }
  0x86   : > { %2139 = dma.done.wait (%p3317_p3), %s253_s29, 2816  }
  0x87   : > { %2141 = vsyncadd (%p3317_p3), %s253_s29, 4294964480  ;;  %s261_s30 = sand.u32 1, %s2227_s19   ;;  %s1890_s12 = smul.u32 40, %s2410_s20 }
  0x88   : > { %s262_s9 = scalar_lea.sflag [#allocation6], %s261_s30 }
  0x89   : > { %s2422_s23 = scalar_lea.vmem [#allocation5], %s1890_s12 }
  0x8a   : > { %2143 = dma.done.wait (%p3317_p3), %s262_s9, 656  }
  0x8b   : > { %2145 = vsyncadd (%p3317_p3), %s262_s9, 4294966640  ;;  %s273_s5 = scalar_lea.vmem [#allocation7], %s2410_s20  ;;  %s279_s10 = scalar_lea.sflag [#allocation9], %s2410_s20 }
  0x8c   : > { %s281_s1 = scalar_lea.vmem [#allocation8], %s2410_s20 }
  0x8d   : > { %2147 = dma.done.wait (%p3317_p3), %s279_s10, 16  }
  0x8e   : > { %2149 = vsyncadd (%p3317_p3), %s279_s10, 4294967280  ;;  %v346_v0 = vlaneseq  ;;  %v2444_v4 = vld [vmem:[%s2414_s14] sm:$0xff]  ;;  %v2447_v5 = vld [vmem:[%s2414_s14 + $0x10] sm:$0xff]  ;;  %vm663_vm0 = vcmask 1045504   ;;  %vm999_vm1 = vcmask 1044480   ;;  %vm1335_vm2 = vcmask 1043456  }
  0x8f   : > { %v2453_v7 = vld [vmem:[%s2414_s14 + $0x20] sm:$0xff]  ;;  %v2465_v11 = vld [vmem:[%s2422_s23 + $0x10] sm:$0x1f]  ;;  %v2468_v12 = vld [vmem:[%s2422_s23 + $0x18] sm:$0x1f]  ;;  %vm1639_vm3 = vcmask 1046528  }
  0x90   : > { %v2435_v1 = vshrl.u32 %v346_v0, 7  ;;  %v2456_v8 = vld [vmem:[%s2422_s23] sm:$0x1f]  ;;  %v2459_v9 = vld [vmem:[%s2422_s23 + $0x8] sm:$0x1f]  ;;  %v2486_v18 = vld [vmem:[%s2414_s14 + $0x30] sm:$0xff] }
  0x91   : > { %v2471_v13 = vld [vmem:[%s2422_s23 + $0x20] sm:$0x1f]  ;;  %v2492_v20 = vld [vmem:[%s2414_s14 + $0x50] sm:$0xff]  ;;  %s1891_s25 = smul.u32 56, %s2410_s20  ;;  %s1884_s24 = sshll.u32 %s2227_s19, 7 }
  0x92   : > { %v2438_v2 = vsub.s32 0, %v2435_v1  ;;  %v2441_v3 = vsub.s32 1, %v2435_v1  ;;  %v2450_v6 = vsub.s32 2, %v2435_v1  ;;  %v2462_v10 = vsub.s32 3, %v2435_v1  ;;  %v2489_v19 = vld [vmem:[%s2414_s14 + $0x40] sm:$0xff]  ;;  %v2508_v26 = vld [vmem:[%s2414_s14 + $0x70] sm:$0xff]  ;;  %s3245_s8 = scalar_lea.hbm %s3293_s4, %s1884_s24 }
  0x93   : > { %v2505_v25 = vld [vmem:[%s2414_s14 + $0x60] sm:$0xff]  ;;  %v2535_v56 = vld [vmem:[%s2414_s14 + $0x90] sm:$0xff]  ;;  %s318_s21 = scalar_lea.vmem [#allocation10], %s1891_s25  ;;  %s1731_s19 = scalar_lea.sflag [#allocation4], %s2410_s20 }
  0x94   : > { %v349_v14 = vrot.slane %v2456_v8, %v2438_v2  ;;  %v367_v15 = vrot.slane %v2459_v9, %v2438_v2  ;;  %v2479_v16 = vrot.slane %v2456_v8, %v2441_v3  ;;  %v2483_v17 = vrot.slane %v2459_v9, %v2441_v3  ;;  %v2523_v39 = vld [vmem:[%s2414_s14 + $0x80] sm:$0xff]  ;;  %s1743_s17 = sshll.u32 %s318_s21, 4  ;;  %p3318_p9 = scmp.ne.s32.totalorder %s3307_s26, 0  ;;  %s3247_s17 = int_to_ptr.vmem [resolvable:$true] %s1743_s17 }
  0x95   : > { %v385_v21 = vrot.slane %v2465_v11, %v2438_v2  ;;  %v403_v22 = vrot.slane %v2468_v12, %v2438_v2  ;;  %v421_v23 = vrot.slane %v2471_v13, %v2438_v2  ;;  %v2502_v24 = vrot.slane %v2465_v11, %v2441_v3  ;;  %s2096_s27 = scalar_lea.vmem %s3247_s17, 896  ;;  %s2177_s28 = smov [#allocation10]  }
  0x96   : > { %v350_v27 = vmul.f32 %v349_v14, %v2444_v4  ;;  %v351_v28 = vmul.f32 %v349_v14, %v2447_v5  ;;  %v352_v29 = vmul.f32 %v349_v14, %v2453_v7  ;;  %v353_v30 = vmul.f32 %v349_v14, %v2486_v18  ;;  %p2097_p12 = scmp.ne.s32.totalorder %s3247_s17, %s2096_s27  ;;  %s2100_s6 = sshll.u32 %s2177_s28, 4  ;;  %s2101_s6 = int_to_ptr.vmem [resolvable:$false] %s2100_s6 }
  0x97   : > { %v354_v31 = vmul.f32 %v349_v14, %v2489_v19  ;;  %v355_v32 = vmul.f32 %v349_v14, %v2492_v20  ;;  %v356_v33 = vmul.f32 %v349_v14, %v2505_v25  ;;  %v368_v34 = vmul.f32 %v367_v15, %v2447_v5  ;;  %s2102_s7 = scalar_lea.vmem %s2101_s6, 1792  ;;  %p2103_p2 = scmp.lt.s32.totalorder %s3247_s17, %s2101_s6 }
  0x98   : > { %v369_v35 = vmul.f32 %v367_v15, %v2453_v7  ;;  %v370_v36 = vmul.f32 %v367_v15, %v2486_v18  ;;  %v371_v37 = vmul.f32 %v367_v15, %v2489_v19  ;;  %v372_v38 = vmul.f32 %v367_v15, %v2492_v20  ;;  %p2098_p13 = pnand %p2097_p12, %p3318_p9  ;;  %p2104_p4 = scmp.lt.s32.totalorder %s2102_s7, %s2096_s27 }
  0x99   : > { %v373_v40 = vmul.f32 %v367_v15, %v2505_v25  ;;  %v374_v41 = vmul.f32 %v367_v15, %v2508_v26  ;;  %v375_v42 = vadd.f32 %v368_v34, %v350_v27  ;;  %v386_v43 = vmul.f32 %v385_v21, %v2453_v7 }
  0x9a   : > { %v376_v44 = vadd.f32 %v369_v35, %v351_v28  ;;  %v377_v45 = vadd.f32 %v370_v36, %v352_v29  ;;  %v378_v46 = vadd.f32 %v371_v37, %v353_v30  ;;  %v379_v47 = vadd.f32 %v372_v38, %v354_v31  ;;  %p2099_p0 = pneg %p2098_p13  ;;  %p2105_p6 = por %p2104_p4, %p2103_p2 }
  0x9b   : > { %v380_v48 = vadd.f32 %v373_v40, %v355_v32  ;;  %v381_v49 = vadd.f32 %v374_v41, %v356_v33  ;;  %v387_v50 = vmul.f32 %v385_v21, %v2486_v18  ;;  %v388_v51 = vmul.f32 %v385_v21, %v2489_v19 }
  0x9c   : > { %v389_v52 = vmul.f32 %v385_v21, %v2492_v20  ;;  %v390_v53 = vmul.f32 %v385_v21, %v2505_v25  ;;  %v391_v54 = vmul.f32 %v385_v21, %v2508_v26  ;;  %v392_v55 = vmul.f32 %v385_v21, %v2523_v39  ;;  %v2543_v21 = vld [vmem:[%s2414_s14 + $0xa0] sm:$0xff]  ;;  %p2106_p10 = pnand %p2105_p6, %p2099_p0 }
  0x9d   : > { %v393_v57 = vadd.f32 %v386_v43, %v375_v42  ;;  %v394_v58 = vadd.f32 %v387_v50, %v376_v44  ;;  %v395_v59 = vadd.f32 %v388_v51, %v377_v45  ;;  %v404_v60 = vmul.f32 %v403_v22, %v2486_v18 }
  0x9e   : > { %v396_v61 = vadd.f32 %v389_v52, %v378_v46  ;;  %v397_v62 = vadd.f32 %v390_v53, %v379_v47  ;;  %v398_v63 = vadd.f32 %v391_v54, %v380_v48  ;;  %v399_v0 = vadd.f32 %v392_v55, %v381_v49 }
  0x9f   : > { %v405_v14 = vmul.f32 %v403_v22, %v2489_v19  ;;  %v406_v15 = vmul.f32 %v403_v22, %v2492_v20  ;;  %v407_v27 = vmul.f32 %v403_v22, %v2505_v25  ;;  %v408_v28 = vmul.f32 %v403_v22, %v2508_v26 }
  0xa0   : > { %v409_v29 = vmul.f32 %v403_v22, %v2523_v39  ;;  %v410_v30 = vmul.f32 %v403_v22, %v2535_v56  ;;  %v411_v31 = vadd.f32 %v404_v60, %v393_v57  ;;  %v422_v32 = vmul.f32 %v421_v23, %v2489_v19 }
  0xa1   : > { %v412_v33 = vadd.f32 %v405_v14, %v394_v58  ;;  %v413_v34 = vadd.f32 %v406_v15, %v395_v59  ;;  %v414_v35 = vadd.f32 %v407_v27, %v396_v61  ;;  %v415_v36 = vadd.f32 %v408_v28, %v397_v62 }
  0xa2   : > { %v416_v37 = vadd.f32 %v409_v29, %v398_v63  ;;  %v417_v38 = vadd.f32 %v410_v30, %v399_v0  ;;  %v423_v40 = vmul.f32 %v421_v23, %v2492_v20  ;;  %v424_v41 = vmul.f32 %v421_v23, %v2505_v25 }
  0xa3   : > { %v425_v42 = vmul.f32 %v421_v23, %v2508_v26  ;;  %v426_v43 = vmul.f32 %v421_v23, %v2523_v39  ;;  %v427_v44 = vmul.f32 %v421_v23, %v2535_v56  ;;  %v428_v22 = vmul.f32 %v421_v23, %v2543_v21 }
  0xa4   : > { %v429_v45 = vadd.f32 %v422_v32, %v411_v31  ;;  %v430_v46 = vadd.f32 %v423_v40, %v412_v33  ;;  %v431_v47 = vadd.f32 %v424_v41, %v413_v34  ;;  %v440_v48 = vmul.f32 %v2479_v16, %v2444_v4 }
  0xa5   : > { %v432_v49 = vadd.f32 %v425_v42, %v414_v35  ;;  %v433_v50 = vadd.f32 %v426_v43, %v415_v36  ;;  %v434_v51 = vadd.f32 %v427_v44, %v416_v37  ;;  %v435_v52 = vadd.f32 %v428_v22, %v417_v38 }
  0xa6   : > { %v441_v53 = vmul.f32 %v2479_v16, %v2447_v5  ;;  %v442_v54 = vmul.f32 %v2479_v16, %v2453_v7  ;;  %v443_v55 = vmul.f32 %v2479_v16, %v2486_v18  ;;  %v444_v23 = vmul.f32 %v2479_v16, %v2489_v19 }
  0xa7   : > { %v445_v57 = vmul.f32 %v2479_v16, %v2492_v20  ;;  %v446_v58 = vmul.f32 %v2479_v16, %v2505_v25  ;;  %v454_v59 = vrot.slane %v440_v48, 1  ;;  %v479_v60 = vmul.f32 %v2483_v17, %v2447_v5 }
  0xa8   : > { %v455_v61 = vrot.slane %v441_v53, 1  ;;  %v456_v62 = vrot.slane %v442_v54, 1  ;;  %v457_v63 = vrot.slane %v443_v55, 1  ;;  %v458_v0 = vrot.slane %v444_v23, 1 }
  0xa9   : > { %v459_v14 = vrot.slane %v445_v57, 1  ;;  %v460_v15 = vrot.slane %v446_v58, 1  ;;  %v468_v27 = vadd.f32 %v454_v59, %v429_v45  ;;  %v480_v28 = vmul.f32 %v2483_v17, %v2453_v7 }
  0xaa   : > { %v469_v29 = vadd.f32 %v455_v61, %v430_v46  ;;  %v470_v30 = vadd.f32 %v456_v62, %v431_v47  ;;  %v471_v31 = vadd.f32 %v457_v63, %v432_v49  ;;  %v472_v32 = vadd.f32 %v458_v0, %v433_v50 }
  0xab   : > { %v473_v33 = vadd.f32 %v459_v14, %v434_v51  ;;  %v474_v16 = vadd.f32 %v460_v15, %v435_v52  ;;  %v481_v34 = vmul.f32 %v2483_v17, %v2486_v18  ;;  %v482_v35 = vmul.f32 %v2483_v17, %v2489_v19 }
  0xac   : > { %v483_v36 = vmul.f32 %v2483_v17, %v2492_v20  ;;  %v484_v37 = vmul.f32 %v2483_v17, %v2505_v25  ;;  %v485_v38 = vmul.f32 %v2483_v17, %v2508_v26  ;;  %v493_v40 = vrot.slane %v479_v60, 1 }
  0xad   : > { %v494_v41 = vrot.slane %v480_v28, 1  ;;  %v495_v42 = vrot.slane %v481_v34, 1  ;;  %v496_v43 = vrot.slane %v482_v35, 1  ;;  %v518_v44 = vmul.f32 %v2502_v24, %v2453_v7 }
  0xae   : > { %v497_v22 = vrot.slane %v483_v36, 1  ;;  %v498_v45 = vrot.slane %v484_v37, 1  ;;  %v499_v46 = vrot.slane %v485_v38, 1  ;;  %v507_v47 = vadd.f32 %v493_v40, %v468_v27 }
  0xaf   : > { %v508_v48 = vadd.f32 %v494_v41, %v469_v29  ;;  %v509_v49 = vadd.f32 %v495_v42, %v470_v30  ;;  %v510_v50 = vadd.f32 %v496_v43, %v471_v31  ;;  %v519_v51 = vmul.f32 %v2502_v24, %v2486_v18 }
  0xb0   : > { %v511_v52 = vadd.f32 %v497_v22, %v472_v32  ;;  %v512_v53 = vadd.f32 %v498_v45, %v473_v33  ;;  %v513_v17 = vadd.f32 %v499_v46, %v474_v16  ;;  %v520_v54 = vmul.f32 %v2502_v24, %v2489_v19 }
  0xb1   : > { %v521_v55 = vmul.f32 %v2502_v24, %v2492_v20  ;;  %v522_v23 = vmul.f32 %v2502_v24, %v2505_v25  ;;  %v523_v57 = vmul.f32 %v2502_v24, %v2508_v26  ;;  %v524_v58 = vmul.f32 %v2502_v24, %v2523_v39 }
  0xb2   : > { %v532_v59 = vrot.slane %v518_v44, 1  ;;  %v533_v60 = vrot.slane %v519_v51, 1  ;;  %v534_v61 = vrot.slane %v520_v54, 1  ;;  %v556_v62 = vrot.slane %v2468_v12, %v2441_v3 }
  0xb3   : > { %v535_v63 = vrot.slane %v521_v55, 1  ;;  %v536_v0 = vrot.slane %v522_v23, 1  ;;  %v537_v14 = vrot.slane %v523_v57, 1  ;;  %v538_v15 = vrot.slane %v524_v58, 1 }
  0xb4   : > { %v546_v27 = vadd.f32 %v532_v59, %v507_v47  ;;  %v547_v28 = vadd.f32 %v533_v60, %v508_v48  ;;  %v548_v29 = vadd.f32 %v534_v61, %v509_v49  ;;  %v557_v30 = vmul.f32 %v556_v62, %v2486_v18  ;;  %v2615_v59 = vld [vmem:[%s2414_s14 + $0x8] sm:$0x7] }
  0xb5   : > { %v549_v31 = vadd.f32 %v535_v63, %v510_v50  ;;  %v550_v32 = vadd.f32 %v536_v0, %v511_v52  ;;  %v551_v33 = vadd.f32 %v537_v14, %v512_v53  ;;  %v552_v16 = vadd.f32 %v538_v15, %v513_v17  ;;  %v2620_v0 = vld [vmem:[%s2414_s14 + $0x18] sm:$0x7] }
  0xb6   : > { %v558_v24 = vmul.f32 %v556_v62, %v2489_v19  ;;  %v559_v34 = vmul.f32 %v556_v62, %v2492_v20  ;;  %v560_v35 = vmul.f32 %v556_v62, %v2505_v25  ;;  %v561_v36 = vmul.f32 %v556_v62, %v2508_v26 }
  0xb7   : > { %v562_v37 = vmul.f32 %v556_v62, %v2523_v39  ;;  %v563_v38 = vmul.f32 %v556_v62, %v2535_v56  ;;  %v571_v40 = vrot.slane %v557_v30, 1  ;;  %v595_v41 = vrot.slane %v2471_v13, %v2441_v3  ;;  %v2626_v30 = vld [vmem:[%s2414_s14 + $0x38] sm:$0x7] }
  0xb8   : > { %v572_v42 = vrot.slane %v558_v24, 1  ;;  %v573_v43 = vrot.slane %v559_v34, 1  ;;  %v574_v44 = vrot.slane %v560_v35, 1  ;;  %v575_v22 = vrot.slane %v561_v36, 1  ;;  %v2630_v24 = vld [vmem:[%s2414_s14 + $0x48] sm:$0x7] }
  0xb9   : > { %v576_v45 = vrot.slane %v562_v37, 1  ;;  %v577_v46 = vrot.slane %v563_v38, 1  ;;  %v585_v47 = vadd.f32 %v571_v40, %v546_v27  ;;  %v596_v48 = vmul.f32 %v595_v41, %v2489_v19  ;;  %v2633_v34 = vld [vmem:[%s2414_s14 + $0x58] sm:$0x7]  ;;  %v2636_v40 = vld [vmem:[%s2414_s14 + $0x68] sm:$0x7] }
  0xba   : > { %v586_v49 = vadd.f32 %v572_v42, %v547_v28  ;;  %v587_v50 = vadd.f32 %v573_v43, %v548_v29  ;;  %v588_v51 = vadd.f32 %v574_v44, %v549_v31  ;;  %v589_v52 = vadd.f32 %v575_v22, %v550_v32  ;;  %v2623_v29 = vld [vmem:[%s2414_s14 + $0x28] sm:$0x7] }
  0xbb   : > { %v590_v53 = vadd.f32 %v576_v45, %v551_v33  ;;  %v591_v17 = vadd.f32 %v577_v46, %v552_v16  ;;  %v597_v54 = vmul.f32 %v595_v41, %v2492_v20  ;;  %v598_v3 = vmul.f32 %v595_v41, %v2505_v25 }
  0xbc   : > { %v599_v55 = vmul.f32 %v595_v41, %v2508_v26  ;;  %v600_v23 = vmul.f32 %v595_v41, %v2523_v39  ;;  %v601_v57 = vmul.f32 %v595_v41, %v2535_v56  ;;  %v602_v58 = vmul.f32 %v595_v41, %v2543_v21 }
  0xbd   : > { %v610_v60 = vrot.slane %v596_v48, 1  ;;  %v611_v61 = vrot.slane %v597_v54, 1  ;;  %v612_v62 = vrot.slane %v598_v3, 1  ;;  %v634_v63 = vrot.slane %v2456_v8, %v2450_v6 }
  0xbe   : > { %v613_v14 = vrot.slane %v599_v55, 1  ;;  %v614_v15 = vrot.slane %v600_v23, 1  ;;  %v615_v27 = vrot.slane %v601_v57, 1  ;;  %v616_v28 = vrot.slane %v602_v58, 1 }
  0xbf   : > { %v624_v31 = vadd.f32 %v610_v60, %v585_v47  ;;  %v625_v32 = vadd.f32 %v611_v61, %v586_v49  ;;  %v626_v33 = vadd.f32 %v612_v62, %v587_v50  ;;  %v635_v16 = vmul.f32 %v634_v63, %v2444_v4 }
  0xc0   : > { %v627_v35 = vadd.f32 %v613_v14, %v588_v51  ;;  %v628_v36 = vadd.f32 %v614_v15, %v589_v52  ;;  %v629_v37 = vadd.f32 %v615_v27, %v590_v53  ;;  %v630_v38 = vadd.f32 %v616_v28, %v591_v17 }
  0xc1   : > { %v636_v41 = vmul.f32 %v634_v63, %v2615_v59  ;;  %v637_v42 = vmul.f32 %v634_v63, %v2447_v5  ;;  %v638_v43 = vmul.f32 %v634_v63, %v2620_v0  ;;  %v639_v44 = vmul.f32 %v634_v63, %v2453_v7 }
  0xc2   : > { %v640_v22 = vmul.f32 %v634_v63, %v2623_v29  ;;  %v641_v45 = vmul.f32 %v634_v63, %v2486_v18  ;;  %v642_v46 = vmul.f32 %v634_v63, %v2626_v30  ;;  %v643_v47 = vmul.f32 %v634_v63, %v2489_v19 }
  0xc3   : > { %v644_v48 = vmul.f32 %v634_v63, %v2630_v24  ;;  %v645_v49 = vmul.f32 %v634_v63, %v2492_v20  ;;  %v646_v50 = vmul.f32 %v634_v63, %v2633_v34  ;;  %v647_v51 = vmul.f32 %v634_v63, %v2505_v25 }
  0xc4   : > { %v648_v52 = vmul.f32 %v634_v63, %v2636_v40  ;;  %v664_v53 = vrot.slane %v635_v16, 2  ;;  %v665_v17 = vrot.slane %v636_v41, 2  ;;  %v667_v54 = vrot.slane %v637_v42, 2 }
  0xc5   : > { %v668_v3 = vrot.slane %v638_v43, 2  ;;  %v670_v55 = vrot.slane %v639_v44, 2  ;;  %v671_v23 = vrot.slane %v640_v22, 2  ;;  %v673_v57 = vrot.slane %v641_v45, 2 }
  0xc6   : > { %v666_v58 = vsel %vm663_vm0, %v664_v53, %v665_v17  ;;  %v674_v60 = vrot.slane %v642_v46, 2  ;;  %v676_v61 = vrot.slane %v643_v47, 2  ;;  %v677_v62 = vrot.slane %v644_v48, 2 }
  0xc7   : > { %v669_v14 = vsel %vm663_vm0, %v667_v54, %v668_v3  ;;  %v672_v15 = vsel %vm663_vm0, %v670_v55, %v671_v23  ;;  %v679_v27 = vrot.slane %v645_v49, 2  ;;  %v680_v28 = vrot.slane %v646_v50, 2 }
  0xc8   : > { %v675_v63 = vsel %vm663_vm0, %v673_v57, %v674_v60  ;;  %v678_v16 = vsel %vm663_vm0, %v676_v61, %v677_v62  ;;  %v682_v41 = vrot.slane %v647_v51, 2  ;;  %v683_v42 = vrot.slane %v648_v52, 2 }
  0xc9   : > { %v681_v43 = vsel %vm663_vm0, %v679_v27, %v680_v28  ;;  %v692_v44 = vadd.f32 %v666_v58, %v624_v31  ;;  %v693_v22 = vadd.f32 %v669_v14, %v625_v32  ;;  %v694_v45 = vadd.f32 %v672_v15, %v626_v33 }
  0xca   : > { %v684_v46 = vsel %vm663_vm0, %v682_v41, %v683_v42  ;;  %v695_v47 = vadd.f32 %v675_v63, %v627_v35  ;;  %v696_v48 = vadd.f32 %v678_v16, %v628_v36  ;;  %v697_v53 = vadd.f32 %v681_v43, %v629_v37  ;;  %v2685_v36 = vld [vmem:[%s2414_s14 + $0x78] sm:$0x7] }
  0xcb   : > { %v698_v17 = vadd.f32 %v684_v46, %v630_v38  ;;  %v702_v49 = vrot.slane %v2459_v9, %v2450_v6  ;;  %v2662_v50 = vrot.slane %v2465_v11, %v2450_v6  ;;  %v2666_v51 = vrot.slane %v2468_v12, %v2450_v6 }
  0xcc   : > { %v2670_v31 = vrot.slane %v2471_v13, %v2450_v6  ;;  %v2674_v32 = vrot.slane %v2456_v8, %v2462_v10  ;;  %v2678_v33 = vrot.slane %v2459_v9, %v2462_v10  ;;  %v2682_v35 = vrot.slane %v2465_v11, %v2462_v10 }
  0xcd   : > { %v703_v12 = vmul.f32 %v702_v49, %v2447_v5  ;;  %v704_v37 = vmul.f32 %v702_v49, %v2620_v0  ;;  %v705_v6 = vmul.f32 %v702_v49, %v2453_v7  ;;  %v706_v13 = vmul.f32 %v702_v49, %v2623_v29 }
  0xce   : > { %v707_v8 = vmul.f32 %v702_v49, %v2486_v18  ;;  %v708_v38 = vmul.f32 %v702_v49, %v2626_v30  ;;  %v709_v9 = vmul.f32 %v702_v49, %v2489_v19  ;;  %v710_v52 = vmul.f32 %v702_v49, %v2630_v24 }
  0xcf   : > { %v711_v11 = vmul.f32 %v702_v49, %v2492_v20  ;;  %v712_v54 = vmul.f32 %v702_v49, %v2633_v34  ;;  %v713_v3 = vmul.f32 %v702_v49, %v2505_v25  ;;  %v714_v55 = vmul.f32 %v702_v49, %v2636_v40 }
  0xd0   : > { %v715_v23 = vmul.f32 %v702_v49, %v2508_v26  ;;  %v716_v57 = vmul.f32 %v702_v49, %v2685_v36  ;;  %v731_v58 = vrot.slane %v703_v12, 2  ;;  %v732_v60 = vrot.slane %v704_v37, 2 }
  0xd1   : > { %v734_v61 = vrot.slane %v705_v6, 2  ;;  %v735_v62 = vrot.slane %v706_v13, 2  ;;  %v737_v14 = vrot.slane %v707_v8, 2  ;;  %v738_v15 = vrot.slane %v708_v38, 2 }
  0xd2   : > { %v733_v27 = vsel %vm663_vm0, %v731_v58, %v732_v60  ;;  %v740_v28 = vrot.slane %v709_v9, 2  ;;  %v741_v63 = vrot.slane %v710_v52, 2  ;;  %v743_v16 = vrot.slane %v711_v11, 2 }
  0xd3   : > { %v736_v41 = vsel %vm663_vm0, %v734_v61, %v735_v62  ;;  %v739_v42 = vsel %vm663_vm0, %v737_v14, %v738_v15  ;;  %v744_v43 = vrot.slane %v712_v54, 2  ;;  %v746_v46 = vrot.slane %v713_v3, 2  ;;  %v2709_v61 = vld [vmem:[%s2414_s14 + $0x88] sm:$0x7] }
  0xd4   : > { %v742_v49 = vsel %vm663_vm0, %v740_v28, %v741_v63  ;;  %v747_v12 = vrot.slane %v714_v55, 2  ;;  %v749_v37 = vrot.slane %v715_v23, 2  ;;  %v750_v6 = vrot.slane %v716_v57, 2 }
  0xd5   : > { %v745_v13 = vsel %vm663_vm0, %v743_v16, %v744_v43  ;;  %v759_v8 = vadd.f32 %v733_v27, %v692_v44  ;;  %v760_v38 = vadd.f32 %v736_v41, %v693_v22  ;;  %v761_v58 = vadd.f32 %v739_v42, %v694_v45 }
  0xd6   : > { %v748_v9 = vsel %vm663_vm0, %v746_v46, %v747_v12  ;;  %v751_v52 = vsel %vm663_vm0, %v749_v37, %v750_v6  ;;  %v762_v11 = vadd.f32 %v742_v49, %v695_v47  ;;  %v763_v60 = vadd.f32 %v745_v13, %v696_v48 }
  0xd7   : > { %v764_v54 = vadd.f32 %v748_v9, %v697_v53  ;;  %v765_v3 = vadd.f32 %v751_v52, %v698_v17  ;;  %v770_v55 = vmul.f32 %v2662_v50, %v2453_v7  ;;  %v771_v23 = vmul.f32 %v2662_v50, %v2623_v29 }
  0xd8   : > { %v772_v44 = vmul.f32 %v2662_v50, %v2486_v18  ;;  %v773_v22 = vmul.f32 %v2662_v50, %v2626_v30  ;;  %v774_v45 = vmul.f32 %v2662_v50, %v2489_v19  ;;  %v775_v47 = vmul.f32 %v2662_v50, %v2630_v24 }
  0xd9   : > { %v776_v48 = vmul.f32 %v2662_v50, %v2492_v20  ;;  %v777_v53 = vmul.f32 %v2662_v50, %v2633_v34  ;;  %v778_v17 = vmul.f32 %v2662_v50, %v2505_v25  ;;  %v779_v57 = vmul.f32 %v2662_v50, %v2636_v40 }
  0xda   : > { %v780_v62 = vmul.f32 %v2662_v50, %v2508_v26  ;;  %v781_v14 = vmul.f32 %v2662_v50, %v2685_v36  ;;  %v782_v15 = vmul.f32 %v2662_v50, %v2523_v39  ;;  %v783_v27 = vmul.f32 %v2662_v50, %v2709_v61 }
  0xdb   : > { %v798_v28 = vrot.slane %v770_v55, 2  ;;  %v799_v63 = vrot.slane %v771_v23, 2  ;;  %v801_v16 = vrot.slane %v772_v44, 2  ;;  %v802_v41 = vrot.slane %v773_v22, 2 }
  0xdc   : > { %v804_v42 = vrot.slane %v774_v45, 2  ;;  %v805_v43 = vrot.slane %v775_v47, 2  ;;  %v807_v46 = vrot.slane %v776_v48, 2  ;;  %v808_v49 = vrot.slane %v777_v53, 2 }
  0xdd   : > { %v800_v12 = vsel %vm663_vm0, %v798_v28, %v799_v63  ;;  %v803_v37 = vsel %vm663_vm0, %v801_v16, %v802_v41  ;;  %v810_v6 = vrot.slane %v778_v17, 2  ;;  %v811_v13 = vrot.slane %v779_v57, 2  ;;  %v2749_v41 = vld [vmem:[%s2414_s14 + $0x98] sm:$0x7] }
  0xde   : > { %v806_v9 = vsel %vm663_vm0, %v804_v42, %v805_v43  ;;  %v809_v52 = vsel %vm663_vm0, %v807_v46, %v808_v49  ;;  %v813_v50 = vrot.slane %v780_v62, 2  ;;  %v814_v55 = vrot.slane %v781_v14, 2 }
  0xdf   : > { %v812_v23 = vsel %vm663_vm0, %v810_v6, %v811_v13  ;;  %v816_v44 = vrot.slane %v782_v15, 2  ;;  %v817_v22 = vrot.slane %v783_v27, 2  ;;  %v826_v45 = vadd.f32 %v800_v12, %v759_v8 }
  0xe0   : > { %v815_v47 = vsel %vm663_vm0, %v813_v50, %v814_v55  ;;  %v827_v48 = vadd.f32 %v803_v37, %v760_v38  ;;  %v828_v53 = vadd.f32 %v806_v9, %v761_v58  ;;  %v829_v28 = vadd.f32 %v809_v52, %v762_v11 }
  0xe1   : > { %v818_v17 = vsel %vm663_vm0, %v816_v44, %v817_v22  ;;  %v830_v57 = vadd.f32 %v812_v23, %v763_v60  ;;  %v831_v63 = vadd.f32 %v815_v47, %v764_v54  ;;  %v837_v16 = vmul.f32 %v2666_v51, %v2486_v18 }
  0xe2   : > { %v832_v62 = vadd.f32 %v818_v17, %v765_v3  ;;  %v838_v14 = vmul.f32 %v2666_v51, %v2626_v30  ;;  %v839_v8 = vmul.f32 %v2666_v51, %v2489_v19  ;;  %v840_v38 = vmul.f32 %v2666_v51, %v2630_v24 }
  0xe3   : > { %v841_v58 = vmul.f32 %v2666_v51, %v2492_v20  ;;  %v842_v11 = vmul.f32 %v2666_v51, %v2633_v34  ;;  %v843_v60 = vmul.f32 %v2666_v51, %v2505_v25  ;;  %v844_v54 = vmul.f32 %v2666_v51, %v2636_v40 }
  0xe4   : > { %v845_v3 = vmul.f32 %v2666_v51, %v2508_v26  ;;  %v846_v15 = vmul.f32 %v2666_v51, %v2685_v36  ;;  %v847_v27 = vmul.f32 %v2666_v51, %v2523_v39  ;;  %v848_v42 = vmul.f32 %v2666_v51, %v2709_v61 }
  0xe5   : > { %v849_v43 = vmul.f32 %v2666_v51, %v2535_v56  ;;  %v850_v46 = vmul.f32 %v2666_v51, %v2749_v41  ;;  %v865_v49 = vrot.slane %v837_v16, 2  ;;  %v866_v12 = vrot.slane %v838_v14, 2 }
  0xe6   : > { %v868_v37 = vrot.slane %v839_v8, 2  ;;  %v869_v6 = vrot.slane %v840_v38, 2  ;;  %v871_v13 = vrot.slane %v841_v58, 2  ;;  %v872_v9 = vrot.slane %v842_v11, 2 }
  0xe7   : > { %v867_v52 = vsel %vm663_vm0, %v865_v49, %v866_v12  ;;  %v874_v50 = vrot.slane %v843_v60, 2  ;;  %v875_v55 = vrot.slane %v844_v54, 2  ;;  %v877_v23 = vrot.slane %v845_v3, 2 }
  0xe8   : > { %v870_v44 = vsel %vm663_vm0, %v868_v37, %v869_v6  ;;  %v873_v22 = vsel %vm663_vm0, %v871_v13, %v872_v9  ;;  %v878_v47 = vrot.slane %v846_v15, 2  ;;  %v880_v17 = vrot.slane %v847_v27, 2  ;;  %v2785_v37 = vld [vmem:[%s2414_s14 + $0xa8] sm:$0x7] }
  0xe9   : > { %v876_v51 = vsel %vm663_vm0, %v874_v50, %v875_v55  ;;  %v881_v16 = vrot.slane %v848_v42, 2  ;;  %v883_v14 = vrot.slane %v849_v43, 2  ;;  %v884_v8 = vrot.slane %v850_v46, 2 }
  0xea   : > { %v879_v38 = vsel %vm663_vm0, %v877_v23, %v878_v47  ;;  %v893_v58 = vadd.f32 %v867_v52, %v826_v45  ;;  %v894_v11 = vadd.f32 %v870_v44, %v827_v48  ;;  %v895_v49 = vadd.f32 %v873_v22, %v828_v53 }
  0xeb   : > { %v882_v60 = vsel %vm663_vm0, %v880_v17, %v881_v16  ;;  %v885_v54 = vsel %vm663_vm0, %v883_v14, %v884_v8  ;;  %v896_v3 = vadd.f32 %v876_v51, %v829_v28  ;;  %v897_v12 = vadd.f32 %v879_v38, %v830_v57 }
  0xec   : > { %v898_v15 = vadd.f32 %v882_v60, %v831_v63  ;;  %v899_v27 = vadd.f32 %v885_v54, %v832_v62  ;;  %v904_v42 = vmul.f32 %v2670_v31, %v2489_v19  ;;  %v905_v43 = vmul.f32 %v2670_v31, %v2630_v24 }
  0xed   : > { %v906_v45 = vmul.f32 %v2670_v31, %v2492_v20  ;;  %v907_v48 = vmul.f32 %v2670_v31, %v2633_v34  ;;  %v908_v53 = vmul.f32 %v2670_v31, %v2505_v25  ;;  %v909_v28 = vmul.f32 %v2670_v31, %v2636_v40 }
  0xee   : > { %v910_v57 = vmul.f32 %v2670_v31, %v2508_v26  ;;  %v911_v63 = vmul.f32 %v2670_v31, %v2685_v36  ;;  %v912_v62 = vmul.f32 %v2670_v31, %v2523_v39  ;;  %v913_v46 = vmul.f32 %v2670_v31, %v2709_v61 }
  0xef   : > { %v914_v6 = vmul.f32 %v2670_v31, %v2535_v56  ;;  %v915_v13 = vmul.f32 %v2670_v31, %v2749_v41  ;;  %v916_v9 = vmul.f32 %v2670_v31, %v2543_v21  ;;  %v917_v52 = vmul.f32 %v2670_v31, %v2785_v37 }
  0xf0   : > { %v932_v50 = vrot.slane %v904_v42, 2  ;;  %v933_v55 = vrot.slane %v905_v43, 2  ;;  %v935_v23 = vrot.slane %v906_v45, 2  ;;  %v936_v44 = vrot.slane %v907_v48, 2 }
  0xf1   : > { %v938_v22 = vrot.slane %v908_v53, 2  ;;  %v939_v47 = vrot.slane %v909_v28, 2  ;;  %v941_v17 = vrot.slane %v910_v57, 2  ;;  %v942_v51 = vrot.slane %v911_v63, 2 }
  0xf2   : > { %v934_v56 = vsel %vm663_vm0, %v932_v50, %v933_v55  ;;  %v937_v16 = vsel %vm663_vm0, %v935_v23, %v936_v44  ;;  %v944_v14 = vrot.slane %v912_v62, 2  ;;  %v945_v8 = vrot.slane %v913_v46, 2 }
  0xf3   : > { %v940_v21 = vsel %vm663_vm0, %v938_v22, %v939_v47  ;;  %v943_v38 = vsel %vm663_vm0, %v941_v17, %v942_v51  ;;  %v947_v31 = vrot.slane %v914_v6, 2  ;;  %v948_v60 = vrot.slane %v915_v13, 2 }
  0xf4   : > { %v946_v54 = vsel %vm663_vm0, %v944_v14, %v945_v8  ;;  %v950_v42 = vrot.slane %v916_v9, 2  ;;  %v951_v43 = vrot.slane %v917_v52, 2  ;;  %v960_v45 = vadd.f32 %v934_v56, %v893_v58 }
  0xf5   : > { %v949_v48 = vsel %vm663_vm0, %v947_v31, %v948_v60  ;;  %v961_v53 = vadd.f32 %v937_v16, %v894_v11  ;;  %v962_v28 = vadd.f32 %v940_v21, %v895_v49  ;;  %v963_v57 = vadd.f32 %v943_v38, %v896_v3 }
  0xf6   : > { %v952_v63 = vsel %vm663_vm0, %v950_v42, %v951_v43  ;;  %v964_v62 = vadd.f32 %v946_v54, %v897_v12  ;;  %v965_v46 = vadd.f32 %v949_v48, %v898_v15  ;;  %v971_v50 = vmul.f32 %v2674_v32, %v2444_v4 }
  0xf7   : > { %v966_v55 = vadd.f32 %v952_v63, %v899_v27  ;;  %v972_v6 = vmul.f32 %v2674_v32, %v2615_v59  ;;  %v973_v13 = vmul.f32 %v2674_v32, %v2447_v5  ;;  %v974_v58 = vmul.f32 %v2674_v32, %v2620_v0 }
  0xf8   : > { %v975_v11 = vmul.f32 %v2674_v32, %v2453_v7  ;;  %v976_v49 = vmul.f32 %v2674_v32, %v2623_v29  ;;  %v977_v3 = vmul.f32 %v2674_v32, %v2486_v18  ;;  %v978_v4 = vmul.f32 %v2674_v32, %v2626_v30 }
  0xf9   : > { %v979_v12 = vmul.f32 %v2674_v32, %v2489_v19  ;;  %v980_v15 = vmul.f32 %v2674_v32, %v2630_v24  ;;  %v981_v27 = vmul.f32 %v2674_v32, %v2492_v20  ;;  %v982_v9 = vmul.f32 %v2674_v32, %v2633_v34 }
  0xfa   : > { %v983_v52 = vmul.f32 %v2674_v32, %v2505_v25  ;;  %v984_v23 = vmul.f32 %v2674_v32, %v2636_v40  ;;  %v1000_v44 = vrot.slane %v971_v50, 3  ;;  %v1001_v22 = vrot.slane %v972_v6, 3 }
  0xfb   : > { %v1003_v47 = vrot.slane %v973_v13, 3  ;;  %v1004_v17 = vrot.slane %v974_v58, 3  ;;  %v1006_v51 = vrot.slane %v975_v11, 3  ;;  %v1007_v56 = vrot.slane %v976_v49, 3 }
  0xfc   : > { %v1002_v16 = vsel %vm999_vm1, %v1000_v44, %v1001_v22  ;;  %v1009_v14 = vrot.slane %v977_v3, 3  ;;  %v1010_v8 = vrot.slane %v978_v4, 3  ;;  %v1012_v21 = vrot.slane %v979_v12, 3 }
  0xfd   : > { %v1005_v38 = vsel %vm999_vm1, %v1003_v47, %v1004_v17  ;;  %v1008_v31 = vsel %vm999_vm1, %v1006_v51, %v1007_v56  ;;  %v1013_v60 = vrot.slane %v980_v15, 3  ;;  %v1015_v54 = vrot.slane %v981_v27, 3 }
  0xfe   : > { %v1011_v42 = vsel %vm999_vm1, %v1009_v14, %v1010_v8  ;;  %v1016_v32 = vrot.slane %v982_v9, 3  ;;  %v1018_v43 = vrot.slane %v983_v52, 3  ;;  %v1019_v48 = vrot.slane %v984_v23, 3 }
  0xff   : > { %v1014_v63 = vsel %vm999_vm1, %v1012_v21, %v1013_v60  ;;  %v1028_v50 = vadd.f32 %v1002_v16, %v960_v45  ;;  %v1029_v6 = vadd.f32 %v1005_v38, %v961_v53  ;;  %v1030_v13 = vadd.f32 %v1008_v31, %v962_v28 }
 0x100   : > { %v1017_v58 = vsel %vm999_vm1, %v1015_v54, %v1016_v32  ;;  %v1020_v11 = vsel %vm999_vm1, %v1018_v43, %v1019_v48  ;;  %v1031_v49 = vadd.f32 %v1011_v42, %v963_v57  ;;  %v1032_v3 = vadd.f32 %v1014_v63, %v964_v62 }
 0x101   : > { %v1033_v4 = vadd.f32 %v1017_v58, %v965_v46  ;;  %v1034_v12 = vadd.f32 %v1020_v11, %v966_v55  ;;  %v1039_v15 = vmul.f32 %v2678_v33, %v2447_v5  ;;  %v1040_v27 = vmul.f32 %v2678_v33, %v2620_v0 }
 0x102   : > { %v1041_v9 = vmul.f32 %v2678_v33, %v2453_v7  ;;  %v1042_v45 = vmul.f32 %v2678_v33, %v2623_v29  ;;  %v1043_v53 = vmul.f32 %v2678_v33, %v2486_v18  ;;  %v1044_v28 = vmul.f32 %v2678_v33, %v2626_v30 }
 0x103   : > { %v1045_v57 = vmul.f32 %v2678_v33, %v2489_v19  ;;  %v1046_v5 = vmul.f32 %v2678_v33, %v2630_v24  ;;  %v1047_v62 = vmul.f32 %v2678_v33, %v2492_v20  ;;  %v1048_v46 = vmul.f32 %v2678_v33, %v2633_v34 }
 0x104   : > { %v1049_v55 = vmul.f32 %v2678_v33, %v2505_v25  ;;  %v1050_v52 = vmul.f32 %v2678_v33, %v2636_v40  ;;  %v1051_v23 = vmul.f32 %v2678_v33, %v2508_v26  ;;  %v1052_v44 = vmul.f32 %v2678_v33, %v2685_v36 }
 0x105   : > { %v1067_v22 = vrot.slane %v1039_v15, 3  ;;  %v1068_v47 = vrot.slane %v1040_v27, 3  ;;  %v1070_v17 = vrot.slane %v1041_v9, 3  ;;  %v1071_v51 = vrot.slane %v1042_v45, 3 }
 0x106   : > { %v1073_v56 = vrot.slane %v1043_v53, 3  ;;  %v1074_v16 = vrot.slane %v1044_v28, 3  ;;  %v1076_v14 = vrot.slane %v1045_v57, 3  ;;  %v1077_v8 = vrot.slane %v1046_v5, 3 }
 0x107   : > { %v1069_v21 = vsel %vm999_vm1, %v1067_v22, %v1068_v47  ;;  %v1072_v38 = vsel %vm999_vm1, %v1070_v17, %v1071_v51  ;;  %v1079_v31 = vrot.slane %v1047_v62, 3  ;;  %v1080_v60 = vrot.slane %v1048_v46, 3 }
 0x108   : > { %v1075_v54 = vsel %vm999_vm1, %v1073_v56, %v1074_v16  ;;  %v1078_v42 = vsel %vm999_vm1, %v1076_v14, %v1077_v8  ;;  %v1082_v32 = vrot.slane %v1049_v55, 3  ;;  %v1083_v33 = vrot.slane %v1050_v52, 3 }
 0x109   : > { %v1081_v43 = vsel %vm999_vm1, %v1079_v31, %v1080_v60  ;;  %v1085_v48 = vrot.slane %v1051_v23, 3  ;;  %v1086_v63 = vrot.slane %v1052_v44, 3  ;;  %v1095_v58 = vadd.f32 %v1069_v21, %v1028_v50 }
 0x10a   : > { %v1084_v11 = vsel %vm999_vm1, %v1082_v32, %v1083_v33  ;;  %v1096_v15 = vadd.f32 %v1072_v38, %v1029_v6  ;;  %v1097_v27 = vadd.f32 %v1075_v54, %v1030_v13  ;;  %v1098_v9 = vadd.f32 %v1078_v42, %v1031_v49 }
 0x10b   : > { %v1087_v45 = vsel %vm999_vm1, %v1085_v48, %v1086_v63  ;;  %v1099_v53 = vadd.f32 %v1081_v43, %v1032_v3  ;;  %v1100_v28 = vadd.f32 %v1084_v11, %v1033_v4  ;;  %v1106_v57 = vmul.f32 %v2682_v35, %v2453_v7  ;;  %v2928_v63 = vld [vmem:[%s2422_s23 + $0x18] sm:$0x1f] }
 0x10c   : > { %v1101_v5 = vadd.f32 %v1087_v45, %v1034_v12  ;;  %v1107_v62 = vmul.f32 %v2682_v35, %v2623_v29  ;;  %v1108_v46 = vmul.f32 %v2682_v35, %v2486_v18  ;;  %v1109_v50 = vmul.f32 %v2682_v35, %v2626_v30 }
 0x10d   : > { %v1110_v6 = vmul.f32 %v2682_v35, %v2489_v19  ;;  %v1111_v13 = vmul.f32 %v2682_v35, %v2630_v24  ;;  %v1112_v49 = vmul.f32 %v2682_v35, %v2492_v20  ;;  %v1113_v7 = vmul.f32 %v2682_v35, %v2633_v34 }
 0x10e   : > { %v1114_v3 = vmul.f32 %v2682_v35, %v2505_v25  ;;  %v1115_v18 = vmul.f32 %v2682_v35, %v2636_v40  ;;  %v1116_v4 = vmul.f32 %v2682_v35, %v2508_v26  ;;  %v1117_v19 = vmul.f32 %v2682_v35, %v2685_v36 }
 0x10f   : > { %v1118_v12 = vmul.f32 %v2682_v35, %v2523_v39  ;;  %v1119_v20 = vmul.f32 %v2682_v35, %v2709_v61  ;;  %v1134_v55 = vrot.slane %v1106_v57, 3  ;;  %v1135_v52 = vrot.slane %v1107_v62, 3  ;;  %v2933_v62 = vld [vmem:[%s2422_s23 + $0x20] sm:$0x1f] }
 0x110   : > { %v1137_v23 = vrot.slane %v1108_v46, 3  ;;  %v1138_v44 = vrot.slane %v1109_v50, 3  ;;  %v1140_v25 = vrot.slane %v1110_v6, 3  ;;  %v1141_v22 = vrot.slane %v1111_v13, 3  ;;  %v2953_v50 = vld [vmem:[%s2414_s14 + $0x50] sm:$0xff]  ;;  %v2958_v6 = vld [vmem:[%s2414_s14 + $0x60] sm:$0xff] }
 0x111   : > { %v1136_v47 = vsel %vm999_vm1, %v1134_v55, %v1135_v52  ;;  %v1143_v17 = vrot.slane %v1112_v49, 3  ;;  %v1144_v51 = vrot.slane %v1113_v7, 3  ;;  %v1146_v26 = vrot.slane %v1114_v3, 3  ;;  %v2963_v7 = vld [vmem:[%s2414_s14 + $0x70] sm:$0xff] }
 0x112   : > { %v1139_v56 = vsel %vm999_vm1, %v1137_v23, %v1138_v44  ;;  %v1142_v16 = vsel %vm999_vm1, %v1140_v25, %v1141_v22  ;;  %v1147_v39 = vrot.slane %v1115_v18, 3  ;;  %v1149_v14 = vrot.slane %v1116_v4, 3  ;;  %v2968_v4 = vld [vmem:[%s2414_s14 + $0x80] sm:$0xff] }
 0x113   : > { %v1145_v35 = vsel %vm999_vm1, %v1143_v17, %v1144_v51  ;;  %v1150_v8 = vrot.slane %v1117_v19, 3  ;;  %v1152_v21 = vrot.slane %v1118_v12, 3  ;;  %v1153_v38 = vrot.slane %v1119_v20, 3  ;;  %v2973_v20 = vld [vmem:[%s2414_s14 + $0x90] sm:$0xff] }
 0x114   : > { %v1148_v31 = vsel %vm999_vm1, %v1146_v26, %v1147_v39  ;;  %v1162_v42 = vadd.f32 %v1136_v47, %v1095_v58  ;;  %v1163_v32 = vadd.f32 %v1139_v56, %v1096_v15  ;;  %v1164_v33 = vadd.f32 %v1142_v16, %v1097_v27  ;;  %v2943_v15 = vld [vmem:[%s2414_s14 + $0x30] sm:$0xff] }
 0x115   : > { %v1151_v60 = vsel %vm999_vm1, %v1149_v14, %v1150_v8  ;;  %v1154_v54 = vsel %vm999_vm1, %v1152_v21, %v1153_v38  ;;  %v1165_v43 = vadd.f32 %v1145_v35, %v1098_v9  ;;  %v1166_v48 = vadd.f32 %v1148_v31, %v1099_v53  ;;  %v2948_v53 = vld [vmem:[%s2414_s14 + $0x40] sm:$0xff] }
 0x116   : > { %v1172_v11 = vrot.slane %v2928_v63, %v2462_v10  ;;  %v1167_v45 = vadd.f32 %v1151_v60, %v1100_v28  ;;  %v1168_v57 = vadd.f32 %v1154_v54, %v1101_v5  ;;  %v2937_v46 = vrot.slane %v2933_v62, %v2462_v10 }
 0x117   : > { %v2940_v58 = vsub.s32 4, %v2435_v1 }
 0x118   : > { %v1173_v27 = vmul.f32 %v2943_v15, %v1172_v11  ;;  %v1174_v9 = vmul.f32 %v1172_v11, %v2626_v30  ;;  %v1175_v28 = vmul.f32 %v2948_v53, %v1172_v11  ;;  %v1176_v5 = vmul.f32 %v1172_v11, %v2630_v24 }
 0x119   : > { %v1177_v10 = vmul.f32 %v2953_v50, %v1172_v11  ;;  %v1178_v1 = vmul.f32 %v1172_v11, %v2633_v34  ;;  %v1179_v13 = vmul.f32 %v2958_v6, %v1172_v11  ;;  %v1180_v49 = vmul.f32 %v1172_v11, %v2636_v40 }
 0x11a   : > { %v1181_v3 = vmul.f32 %v2963_v7, %v1172_v11  ;;  %v1182_v18 = vmul.f32 %v1172_v11, %v2685_v36  ;;  %v1183_v19 = vmul.f32 %v2968_v4, %v1172_v11  ;;  %v1184_v12 = vmul.f32 %v1172_v11, %v2709_v61 }
 0x11b   : > { %v1185_v55 = vmul.f32 %v2973_v20, %v1172_v11  ;;  %v1186_v52 = vmul.f32 %v1172_v11, %v2749_v41  ;;  %v1201_v23 = vrot.slane %v1173_v27, 3  ;;  %v1202_v44 = vrot.slane %v1174_v9, 3 }
 0x11c   : > { %v1204_v25 = vrot.slane %v1175_v28, 3  ;;  %v1205_v22 = vrot.slane %v1176_v5, 3  ;;  %v1207_v47 = vrot.slane %v1177_v10, 3  ;;  %v1208_v17 = vrot.slane %v1178_v1, 3 }
 0x11d   : > { %v1203_v51 = vsel %vm999_vm1, %v1201_v23, %v1202_v44  ;;  %v1210_v26 = vrot.slane %v1179_v13, 3  ;;  %v1211_v56 = vrot.slane %v1180_v49, 3  ;;  %v1213_v16 = vrot.slane %v1181_v3, 3 }
 0x11e   : > { %v1206_v39 = vsel %vm999_vm1, %v1204_v25, %v1205_v22  ;;  %v1209_v14 = vsel %vm999_vm1, %v1207_v47, %v1208_v17  ;;  %v1214_v35 = vrot.slane %v1182_v18, 3  ;;  %v1216_v8 = vrot.slane %v1183_v19, 3 }
 0x11f   : > { %v1212_v21 = vsel %vm999_vm1, %v1210_v26, %v1211_v56  ;;  %v1217_v38 = vrot.slane %v1184_v12, 3  ;;  %v1219_v31 = vrot.slane %v1185_v55, 3  ;;  %v1220_v60 = vrot.slane %v1186_v52, 3  ;;  %v3009_v52 = vld [vmem:[%s2414_s14 + $0xa0] sm:$0xff] }
 0x120   : > { %v1215_v54 = vsel %vm999_vm1, %v1213_v16, %v1214_v35  ;;  %v1229_v11 = vadd.f32 %v1203_v51, %v1162_v42  ;;  %v1230_v27 = vadd.f32 %v1206_v39, %v1163_v32  ;;  %v1231_v9 = vadd.f32 %v1209_v14, %v1164_v33 }
 0x121   : > { %v1218_v28 = vsel %vm999_vm1, %v1216_v8, %v1217_v38  ;;  %v1221_v5 = vsel %vm999_vm1, %v1219_v31, %v1220_v60  ;;  %v1232_v10 = vadd.f32 %v1212_v21, %v1165_v43  ;;  %v1233_v1 = vadd.f32 %v1215_v54, %v1166_v48 }
 0x122   : > { %v1234_v13 = vadd.f32 %v1218_v28, %v1167_v45  ;;  %v1235_v49 = vadd.f32 %v1221_v5, %v1168_v57  ;;  %v1240_v3 = vmul.f32 %v2948_v53, %v2937_v46  ;;  %v1241_v18 = vmul.f32 %v2937_v46, %v2630_v24 }
 0x123   : > { %v1242_v42 = vmul.f32 %v2953_v50, %v2937_v46  ;;  %v1243_v32 = vmul.f32 %v2937_v46, %v2633_v34  ;;  %v1244_v33 = vmul.f32 %v2958_v6, %v2937_v46  ;;  %v1245_v43 = vmul.f32 %v2937_v46, %v2636_v40 }
 0x124   : > { %v1246_v48 = vmul.f32 %v2963_v7, %v2937_v46  ;;  %v1247_v45 = vmul.f32 %v2937_v46, %v2685_v36  ;;  %v1248_v57 = vmul.f32 %v2968_v4, %v2937_v46  ;;  %v1249_v19 = vmul.f32 %v2937_v46, %v2709_v61 }
 0x125   : > { %v1250_v12 = vmul.f32 %v2973_v20, %v2937_v46  ;;  %v1251_v55 = vmul.f32 %v2937_v46, %v2749_v41  ;;  %v1252_v23 = vmul.f32 %v3009_v52, %v2937_v46  ;;  %v1253_v44 = vmul.f32 %v2937_v46, %v2785_v37 }
 0x126   : > { %v1268_v25 = vrot.slane %v1240_v3, 3  ;;  %v1269_v22 = vrot.slane %v1241_v18, 3  ;;  %v1271_v47 = vrot.slane %v1242_v42, 3  ;;  %v1272_v17 = vrot.slane %v1243_v32, 3 }
 0x127   : > { %v1274_v51 = vrot.slane %v1244_v33, 3  ;;  %v1275_v26 = vrot.slane %v1245_v43, 3  ;;  %v1277_v56 = vrot.slane %v1246_v48, 3  ;;  %v1278_v16 = vrot.slane %v1247_v45, 3  ;;  %v1971_v43 = vld [vmem:[%s2422_s23] sm:$0x1f] }
 0x128   : > { %v1270_v39 = vsel %vm999_vm1, %v1268_v25, %v1269_v22  ;;  %v1273_v14 = vsel %vm999_vm1, %v1271_v47, %v1272_v17  ;;  %v1280_v35 = vrot.slane %v1248_v57, 3  ;;  %v1281_v8 = vrot.slane %v1249_v19, 3 }
 0x129   : > { %v1276_v21 = vsel %vm999_vm1, %v1274_v51, %v1275_v26  ;;  %v1279_v38 = vsel %vm999_vm1, %v1277_v56, %v1278_v16  ;;  %v1283_v46 = vrot.slane %v1250_v12, 3  ;;  %v1284_v31 = vrot.slane %v1251_v55, 3  ;;  %v1972_v12 = vld [vmem:[%s2422_s23 + $0x8] sm:$0x1f] }
 0x12a   : > { %v1282_v60 = vsel %vm999_vm1, %v1280_v35, %v1281_v8  ;;  %v1286_v54 = vrot.slane %v1252_v23, 3  ;;  %v1287_v28 = vrot.slane %v1253_v44, 3  ;;  %v1296_v3 = vadd.f32 %v1270_v39, %v1229_v11  ;;  %v1973_v11 = vld [vmem:[%s2414_s14] sm:$0xff]  ;;  %v1974_v44 = vld [vmem:[%s2414_s14 + $0x10] sm:$0xff] }
 0x12b   : > { %v1285_v5 = vsel %vm999_vm1, %v1283_v46, %v1284_v31  ;;  %v1297_v18 = vadd.f32 %v1273_v14, %v1230_v27  ;;  %v1298_v32 = vadd.f32 %v1276_v21, %v1231_v9  ;;  %v1299_v33 = vadd.f32 %v1279_v38, %v1232_v10  ;;  %v3035_v10 = vld [vmem:[%s2414_s14 + $0x20] sm:$0xff] }
 0x12c   : > { %v1288_v42 = vsel %vm999_vm1, %v1286_v54, %v1287_v28  ;;  %v1306_v48 = vrot.slane %v1971_v43, %v2940_v58  ;;  %v1300_v45 = vadd.f32 %v1282_v60, %v1233_v1  ;;  %v3024_v57 = vadd.f32 %v1285_v5, %v1234_v13 }
 0x12d   : > { %v3026_v19 = vadd.f32 %v1288_v42, %v1235_v49  ;;  %v1374_v55 = vrot.slane %v1972_v12, %v2940_v58 }
 0x12e   : > { %v1307_v23 = vmul.f32 %v1973_v11, %v1306_v48  ;;  %v1308_v27 = vmul.f32 %v1306_v48, %v2615_v59  ;;  %v1309_v25 = vmul.f32 %v1974_v44, %v1306_v48  ;;  %v1310_v9 = vmul.f32 %v1306_v48, %v2620_v0 }
 0x12f   : > { %v1311_v22 = vmul.f32 %v3035_v10, %v1306_v48  ;;  %v1312_v1 = vmul.f32 %v1306_v48, %v2623_v29  ;;  %v1313_v13 = vmul.f32 %v2943_v15, %v1306_v48  ;;  %v1314_v49 = vmul.f32 %v1306_v48, %v2626_v30 }
 0x130   : > { %v1315_v47 = vmul.f32 %v2948_v53, %v1306_v48  ;;  %v1316_v17 = vmul.f32 %v1306_v48, %v2630_v24  ;;  %v1317_v59 = vmul.f32 %v2953_v50, %v1306_v48  ;;  %v1318_v51 = vmul.f32 %v1306_v48, %v2633_v34 }
 0x131   : > { %v1319_v26 = vmul.f32 %v2958_v6, %v1306_v48  ;;  %v1320_v56 = vmul.f32 %v1306_v48, %v2636_v40  ;;  %v1336_v16 = vrot.slane %v1307_v23, 4  ;;  %v1337_v39 = vrot.slane %v1308_v27, 4 }
 0x132   : > { %v1339_v14 = vrot.slane %v1309_v25, 4  ;;  %v1340_v35 = vrot.slane %v1310_v9, 4  ;;  %v1342_v8 = vrot.slane %v1311_v22, 4  ;;  %v1343_v21 = vrot.slane %v1312_v1, 4  ;;  %v1976_v25 = vld [vmem:[%s2422_s23 + $0x10] sm:$0x1f] }
 0x133   : > { %v1338_v38 = vsel %vm1335_vm2, %v1336_v16, %v1337_v39  ;;  %v1345_v46 = vrot.slane %v1313_v13, 4  ;;  %v1346_v31 = vrot.slane %v1314_v49, 4  ;;  %v1348_v60 = vrot.slane %v1315_v47, 4 }
 0x134   : > { %v1341_v54 = vsel %vm1335_vm2, %v1339_v14, %v1340_v35  ;;  %v1344_v28 = vsel %vm1335_vm2, %v1342_v8, %v1343_v21  ;;  %v1349_v5 = vrot.slane %v1316_v17, 4  ;;  %v1351_v42 = vrot.slane %v1317_v59, 4 }
 0x135   : > { %v1347_v43 = vsel %vm1335_vm2, %v1345_v46, %v1346_v31  ;;  %v1352_v48 = vrot.slane %v1318_v51, 4  ;;  %v1354_v12 = vrot.slane %v1319_v26, 4  ;;  %v1355_v11 = vrot.slane %v1320_v56, 4 }
 0x136   : > { %v1350_v23 = vsel %vm1335_vm2, %v1348_v60, %v1349_v5  ;;  %v1364_v27 = vadd.f32 %v1338_v38, %v1296_v3  ;;  %v3054_v9 = vrot.slane %v1976_v25, %v2940_v58  ;;  %v3058_v22 = vrot.slane %v2928_v63, %v2940_v58 }
 0x137   : > { %v1353_v1 = vsel %vm1335_vm2, %v1351_v42, %v1352_v48  ;;  %v1356_v13 = vsel %vm1335_vm2, %v1354_v12, %v1355_v11  ;;  %v1365_v49 = vadd.f32 %v1341_v54, %v1297_v18  ;;  %v1366_v47 = vadd.f32 %v1344_v28, %v1298_v32 }
 0x138   : > { %v1367_v17 = vadd.f32 %v1347_v43, %v1299_v33  ;;  %v1368_v59 = vadd.f32 %v1350_v23, %v1300_v45  ;;  %v1375_v51 = vmul.f32 %v1974_v44, %v1374_v55  ;;  %v1376_v26 = vmul.f32 %v1374_v55, %v2620_v0 }
 0x139   : > { %v1377_v3 = vmul.f32 %v3035_v10, %v1374_v55  ;;  %v1378_v56 = vmul.f32 %v1374_v55, %v2623_v29  ;;  %v1379_v16 = vmul.f32 %v2943_v15, %v1374_v55  ;;  %v1380_v63 = vmul.f32 %v1374_v55, %v2626_v30 }
 0x13a   : > { %v1381_v39 = vmul.f32 %v2948_v53, %v1374_v55  ;;  %v1382_v14 = vmul.f32 %v1374_v55, %v2630_v24  ;;  %v1383_v18 = vmul.f32 %v2953_v50, %v1374_v55  ;;  %v1384_v32 = vmul.f32 %v1374_v55, %v2633_v34 }
 0x13b   : > { %v1385_v33 = vmul.f32 %v2958_v6, %v1374_v55  ;;  %v1386_v0 = vmul.f32 %v1374_v55, %v2636_v40  ;;  %v1387_v45 = vmul.f32 %v2963_v7, %v1374_v55  ;;  %v1388_v29 = vmul.f32 %v1374_v55, %v2685_v36 }
 0x13c   : > { %v1403_v44 = vrot.slane %v1375_v51, 4  ;;  %v1404_v35 = vrot.slane %v1376_v26, 4  ;;  %v1406_v8 = vrot.slane %v1377_v3, 4  ;;  %v1407_v30 = vrot.slane %v1378_v56, 4 }
 0x13d   : > { %v1409_v21 = vrot.slane %v1379_v16, 4  ;;  %v1410_v38 = vrot.slane %v1380_v63, 4  ;;  %v1412_v46 = vrot.slane %v1381_v39, 4  ;;  %v1413_v24 = vrot.slane %v1382_v14, 4  ;;  %v1977_v16 = vld [vmem:[%s2414_s14 + $0x28] sm:$0x7] }
 0x13e   : > { %v1405_v31 = vsel %vm1335_vm2, %v1403_v44, %v1404_v35  ;;  %v1408_v34 = vsel %vm1335_vm2, %v1406_v8, %v1407_v30  ;;  %v1415_v60 = vrot.slane %v1383_v18, 4  ;;  %v1416_v54 = vrot.slane %v1384_v32, 4  ;;  %v3095_v39 = vld [vmem:[%s2414_s14 + $0x48] sm:$0x7] }
 0x13f   : > { %v1411_v40 = vsel %vm1335_vm2, %v1409_v21, %v1410_v38  ;;  %v1414_v28 = vsel %vm1335_vm2, %v1412_v46, %v1413_v24  ;;  %v1418_v55 = vrot.slane %v1385_v33, 4  ;;  %v1419_v5 = vrot.slane %v1386_v0, 4  ;;  %v3109_v18 = vld [vmem:[%s2414_s14 + $0x68] sm:$0x7] }
 0x140   : > { %v1369_v42 = vadd.f32 %v1353_v1, %v3024_v57  ;;  %v1417_v43 = vsel %vm1335_vm2, %v1415_v60, %v1416_v54  ;;  %v1421_v48 = vrot.slane %v1387_v45, 4  ;;  %v1422_v12 = vrot.slane %v1388_v29, 4 }
 0x141   : > { %v1370_v11 = vadd.f32 %v1356_v13, %v3026_v19  ;;  %v1420_v23 = vsel %vm1335_vm2, %v1418_v55, %v1419_v5  ;;  %v1431_v25 = vadd.f32 %v1405_v31, %v1364_v27  ;;  %v1432_v51 = vadd.f32 %v1408_v34, %v1365_v49  ;;  %v1978_v13 = vld [vmem:[%s2414_s14 + $0x38] sm:$0x7] }
 0x142   : > { %v1423_v26 = vsel %vm1335_vm2, %v1421_v48, %v1422_v12  ;;  %v1433_v3 = vadd.f32 %v1411_v40, %v1366_v47  ;;  %v1434_v56 = vadd.f32 %v1414_v28, %v1367_v17  ;;  %v1442_v57 = vmul.f32 %v3035_v10, %v3054_v9  ;;  %v3102_v17 = vld [vmem:[%s2414_s14 + $0x58] sm:$0x7] }
 0x143   : > { %v1435_v1 = vadd.f32 %v1417_v43, %v1368_v59  ;;  %v1443_v63 = vmul.f32 %v1977_v16, %v3054_v9  ;;  %v1444_v19 = vmul.f32 %v2943_v15, %v3054_v9  ;;  %v1445_v27 = vmul.f32 %v1978_v13, %v3054_v9 }
 0x144   : > { %v1446_v49 = vmul.f32 %v2948_v53, %v3054_v9  ;;  %v1447_v47 = vmul.f32 %v3095_v39, %v3054_v9  ;;  %v1448_v10 = vmul.f32 %v2953_v50, %v3054_v9  ;;  %v1449_v59 = vmul.f32 %v3102_v17, %v3054_v9 }
 0x145   : > { %v1450_v14 = vmul.f32 %v2958_v6, %v3054_v9  ;;  %v1451_v32 = vmul.f32 %v3109_v18, %v3054_v9  ;;  %v1452_v33 = vmul.f32 %v2963_v7, %v3054_v9  ;;  %v1453_v0 = vmul.f32 %v3054_v9, %v2685_v36 }
 0x146   : > { %v1454_v45 = vmul.f32 %v2968_v4, %v3054_v9  ;;  %v1455_v29 = vmul.f32 %v3054_v9, %v2709_v61  ;;  %v1470_v44 = vrot.slane %v1442_v57, 4  ;;  %v1471_v35 = vrot.slane %v1443_v63, 4 }
 0x147   : > { %v1473_v8 = vrot.slane %v1444_v19, 4  ;;  %v1474_v30 = vrot.slane %v1445_v27, 4  ;;  %v1476_v21 = vrot.slane %v1446_v49, 4  ;;  %v1477_v38 = vrot.slane %v1447_v47, 4 }
 0x148   : > { %v1472_v46 = vsel %vm1335_vm2, %v1470_v44, %v1471_v35  ;;  %v1479_v24 = vrot.slane %v1448_v10, 4  ;;  %v1480_v31 = vrot.slane %v1449_v59, 4  ;;  %v1482_v34 = vrot.slane %v1450_v14, 4 }
 0x149   : > { %v1475_v60 = vsel %vm1335_vm2, %v1473_v8, %v1474_v30  ;;  %v1478_v36 = vsel %vm1335_vm2, %v1476_v21, %v1477_v38  ;;  %v1483_v54 = vrot.slane %v1451_v32, 4  ;;  %v1485_v40 = vrot.slane %v1452_v33, 4 }
 0x14a   : > { %v1481_v28 = vsel %vm1335_vm2, %v1479_v24, %v1480_v31  ;;  %v1486_v9 = vrot.slane %v1453_v0, 4  ;;  %v1488_v55 = vrot.slane %v1454_v45, 4  ;;  %v1489_v5 = vrot.slane %v1455_v29, 4 }
 0x14b   : > { %v1436_v43 = vadd.f32 %v1420_v23, %v1369_v42  ;;  %v1437_v48 = vadd.f32 %v1423_v26, %v1370_v11  ;;  %v1484_v12 = vsel %vm1335_vm2, %v1482_v34, %v1483_v54  ;;  %v1498_v57 = vadd.f32 %v1472_v46, %v1431_v25 }
 0x14c   : > { %v1487_v16 = vsel %vm1335_vm2, %v1485_v40, %v1486_v9  ;;  %v1490_v63 = vsel %vm1335_vm2, %v1488_v55, %v1489_v5  ;;  %v1499_v19 = vadd.f32 %v1475_v60, %v1432_v51  ;;  %v1500_v27 = vadd.f32 %v1478_v36, %v1433_v3  ;;  %v1982_v3 = vld [vmem:[%s2414_s14 + $0x78] sm:$0x7] }
 0x14d   : > { %v1501_v49 = vadd.f32 %v1481_v28, %v1434_v56  ;;  %v1502_v47 = vadd.f32 %v1484_v12, %v1435_v1  ;;  %v1509_v10 = vmul.f32 %v2943_v15, %v3058_v22  ;;  %v1510_v59 = vmul.f32 %v1978_v13, %v3058_v22 }
 0x14e   : > { %v1511_v42 = vmul.f32 %v2948_v53, %v3058_v22  ;;  %v1512_v11 = vmul.f32 %v3095_v39, %v3058_v22  ;;  %v1513_v23 = vmul.f32 %v2953_v50, %v3058_v22  ;;  %v1514_v25 = vmul.f32 %v3102_v17, %v3058_v22 }
 0x14f   : > { %v1515_v51 = vmul.f32 %v2958_v6, %v3058_v22  ;;  %v1516_v15 = vmul.f32 %v3109_v18, %v3058_v22  ;;  %v1517_v26 = vmul.f32 %v2963_v7, %v3058_v22  ;;  %v1518_v56 = vmul.f32 %v1982_v3, %v3058_v22 }
 0x150   : > { %v1519_v1 = vmul.f32 %v2968_v4, %v3058_v22  ;;  %v1520_v13 = vmul.f32 %v3058_v22, %v2709_v61  ;;  %v1521_v14 = vmul.f32 %v2973_v20, %v3058_v22  ;;  %v1522_v32 = vmul.f32 %v3058_v22, %v2749_v41 }
 0x151   : > { %v1537_v33 = vrot.slane %v1509_v10, 4  ;;  %v1538_v0 = vrot.slane %v1510_v59, 4  ;;  %v1540_v45 = vrot.slane %v1511_v42, 4  ;;  %v1541_v29 = vrot.slane %v1512_v11, 4 }
 0x152   : > { %v1543_v44 = vrot.slane %v1513_v23, 4  ;;  %v1544_v35 = vrot.slane %v1514_v25, 4  ;;  %v1546_v8 = vrot.slane %v1515_v51, 4  ;;  %v1547_v30 = vrot.slane %v1516_v15, 4 }
 0x153   : > { %v1503_v21 = vadd.f32 %v1487_v16, %v1436_v43  ;;  %v1539_v38 = vsel %vm1335_vm2, %v1537_v33, %v1538_v0  ;;  %v1549_v46 = vrot.slane %v1517_v26, 4  ;;  %v1550_v24 = vrot.slane %v1518_v56, 4 }
 0x154   : > { %v1542_v61 = vsel %vm1335_vm2, %v1540_v45, %v1541_v29  ;;  %v1545_v31 = vsel %vm1335_vm2, %v1543_v44, %v1544_v35  ;;  %v1552_v34 = vrot.slane %v1519_v1, 4  ;;  %v1553_v60 = vrot.slane %v1520_v13, 4 }
 0x155   : > { %v1548_v22 = vsel %vm1335_vm2, %v1546_v8, %v1547_v30  ;;  %v1551_v36 = vsel %vm1335_vm2, %v1549_v46, %v1550_v24  ;;  %v1555_v54 = vrot.slane %v1521_v14, 4  ;;  %v1556_v40 = vrot.slane %v1522_v32, 4 }
 0x156   : > { %v1504_v28 = vadd.f32 %v1490_v63, %v1437_v48  ;;  %v1554_v9 = vsel %vm1335_vm2, %v1552_v34, %v1553_v60  ;;  %v1565_v55 = vadd.f32 %v1539_v38, %v1498_v57  ;;  %v1566_v5 = vadd.f32 %v1542_v61, %v1499_v19 }
 0x157   : > { %v1567_v43 = vadd.f32 %v1545_v31, %v1500_v27  ;;  %v1575_v12 = vrot.slane %v2933_v62, %v2940_v58  ;;  %v1557_v16 = vsel %vm1335_vm2, %v1555_v54, %v1556_v40  ;;  %v1568_v10 = vadd.f32 %v1548_v22, %v1501_v49  ;;  %v1983_v49 = vld [vmem:[%s2414_s14 + $0x88] sm:$0x7] }
 0x158   : > { %v1569_v59 = vadd.f32 %v1551_v36, %v1502_v47  ;;  %v1570_v42 = vadd.f32 %v1554_v9, %v1503_v21  ;;  %v1571_v44 = vadd.f32 %v1557_v16, %v1504_v28 }
 0x159   : > { %v1576_v11 = vmul.f32 %v2948_v53, %v1575_v12  ;;  %v1577_v23 = vmul.f32 %v3095_v39, %v1575_v12  ;;  %v1578_v48 = vmul.f32 %v2953_v50, %v1575_v12  ;;  %v1579_v57 = vmul.f32 %v3102_v17, %v1575_v12 }
 0x15a   : > { %v1580_v63 = vmul.f32 %v2958_v6, %v1575_v12  ;;  %v1581_v19 = vmul.f32 %v3109_v18, %v1575_v12  ;;  %v1582_v62 = vmul.f32 %v2963_v7, %v1575_v12  ;;  %v1583_v58 = vmul.f32 %v1982_v3, %v1575_v12 }
 0x15b   : > { %v1584_v27 = vmul.f32 %v2968_v4, %v1575_v12  ;;  %v1585_v47 = vmul.f32 %v1983_v49, %v1575_v12  ;;  %v1586_v25 = vmul.f32 %v2973_v20, %v1575_v12  ;;  %v1587_v53 = vmul.f32 %v1575_v12, %v2749_v41 }
 0x15c   : > { %v1588_v39 = vmul.f32 %v3009_v52, %v1575_v12  ;;  %v1589_v50 = vmul.f32 %v1575_v12, %v2785_v37  ;;  %v1604_v17 = vrot.slane %v1576_v11, 4  ;;  %v1605_v51 = vrot.slane %v1577_v23, 4 }
 0x15d   : > { %v1607_v6 = vrot.slane %v1578_v48, 4  ;;  %v1608_v15 = vrot.slane %v1579_v57, 4  ;;  %v1610_v18 = vrot.slane %v1580_v63, 4  ;;  %v1611_v26 = vrot.slane %v1581_v19, 4 }
 0x15e   : > { %v1606_v7 = vsel %vm1335_vm2, %v1604_v17, %v1605_v51  ;;  %v1613_v3 = vrot.slane %v1582_v62, 4  ;;  %v1614_v4 = vrot.slane %v1583_v58, 4  ;;  %v1616_v56 = vrot.slane %v1584_v27, 4 }
 0x15f   : > { %v1609_v1 = vsel %vm1335_vm2, %v1607_v6, %v1608_v15  ;;  %v1612_v20 = vsel %vm1335_vm2, %v1610_v18, %v1611_v26  ;;  %v1617_v41 = vrot.slane %v1585_v47, 4  ;;  %v1619_v13 = vrot.slane %v1586_v25, 4 }
 0x160   : > { %v1615_v52 = vsel %vm1335_vm2, %v1613_v3, %v1614_v4  ;;  %v1620_v37 = vrot.slane %v1587_v53, 4  ;;  %v1622_v14 = vrot.slane %v1588_v39, 4  ;;  %v1623_v32 = vrot.slane %v1589_v50, 4 }
 0x161   : > { %v1618_v33 = vsel %vm1335_vm2, %v1616_v56, %v1617_v41  ;;  %v3182_v0 = vadd.f32 %v1606_v7, %v1565_v55  ;;  %v3184_v45 = vadd.f32 %v1609_v1, %v1566_v5  ;;  %v3186_v29 = vadd.f32 %v1612_v20, %v1567_v43 }
 0x162   : > { %v1621_v35 = vsel %vm1335_vm2, %v1619_v13, %v1620_v37  ;;  %v3189_v8 = vadd.f32 %v1615_v52, %v1568_v10  ;;  %v1624_v30 = vsel %vm1335_vm2, %v1622_v14, %v1623_v32  ;;  %v3192_v21 = vadd.f32 %v1618_v33, %v1569_v59  ;;  %v1690_v32 = vld [vmem:[%s273_s5] sm:$0x1] }
 0x163   : > { %v1640_v38 = vsel %vm1639_vm3, %v3182_v0, 0.0  ;;  %v1641_v46 = vsel %vm1639_vm3, %v3184_v45, 0.0  ;;  %v1643_v61 = vsel %vm1639_vm3, %v3186_v29, 0.0  ;;  %v3200_v31 = vadd.f32 %v1621_v35, %v1570_v42  ;;  %v1694_v35 = vld [vmem:[%s281_s1] sm:$0x1] }
 0x164   : > { %v1642_v24 = vadd.f32 %v1641_v46, %v1640_v38  ;;  %v1645_v34 = vsel %vm1639_vm3, %v3189_v8, 0.0  ;;  %v1659_v60 = vmul.f32 %v3182_v0, %v3182_v0  ;;  %v1660_v22 = vmul.f32 %v3184_v45, %v3184_v45 }
 0x165   : > { %v1638_v36 = vadd.f32 %v1624_v30, %v1571_v44  ;;  %v1661_v40 = vmul.f32 %v3186_v29, %v3186_v29  ;;  %v1662_v28 = vmul.f32 %v3189_v8, %v3189_v8  ;;  %v1647_v9 = vsel %vm1639_vm3, %v3192_v21, 0.0 }
 0x166   : > { %v1644_v54 = vadd.f32 %v1643_v61, %v1642_v24  ;;  %v1663_v55 = vmul.f32 %v3192_v21, %v3192_v21  ;;  %v1666_v5 = vsel %vm1639_vm3, %v1659_v60, 0.0  ;;  %v1667_v43 = vsel %vm1639_vm3, %v1660_v22, 0.0 }
 0x167   : > { %v1668_v16 = vadd.f32 %v1667_v43, %v1666_v5  ;;  %v1669_v10 = vsel %vm1639_vm3, %v1661_v40, 0.0  ;;  %v1649_v59 = vsel %vm1639_vm3, %v3200_v31, 0.0  ;;  %v1664_v42 = vmul.f32 %v3200_v31, %v3200_v31 }
 0x168   : > { %v1646_v12 = vadd.f32 %v1645_v34, %v1644_v54  ;;  %v1671_v11 = vsel %vm1639_vm3, %v1662_v28, 0.0  ;;  %v1651_v57 = vsel %vm1639_vm3, %v1638_v36, 0.0  ;;  %v1665_v63 = vmul.f32 %v1638_v36, %v1638_v36 }
 0x169   : > { %v1670_v48 = vadd.f32 %v1669_v10, %v1668_v16  ;;  %v1673_v19 = vsel %vm1639_vm3, %v1663_v55, 0.0  ;;  %v1675_v27 = vsel %vm1639_vm3, %v1664_v42, 0.0 }
 0x16a   : > { %v1648_v23 = vadd.f32 %v1647_v9, %v1646_v12  ;;  %v1677_v25 = vsel %vm1639_vm3, %v1665_v63, 0.0 }
 0x16b   : > { %v1672_v58 = vadd.f32 %v1671_v11, %v1670_v48 }
 0x16c   : > { %v1650_v62 = vadd.f32 %v1649_v59, %v1648_v23 }
 0x16d   : > { %v1674_v47 = vadd.f32 %v1673_v19, %v1672_v58 }
 0x16e   : > { %v1652_v49 = vadd.f32 %v1651_v57, %v1650_v62 }
 0x16f   : > { %v1676_v39 = vadd.f32 %v1675_v27, %v1674_v47 }
 0x170   : > { %v1653_v53 = vrot.slane %v1652_v49, 4 }
 0x171   : > { %v1678_v17 = vadd.f32 %v1677_v25, %v1676_v39 }
 0x172   : > { %v1654_v50 = vadd.f32 %v1653_v53, %v1652_v49 }
 0x173   : > { %v1679_v6 = vrot.slane %v1678_v17, 4 }
 0x174   : > { %v1655_v51 = vrot.slane %v1654_v50, 2 }
 0x175   : > { %v1680_v18 = vadd.f32 %v1679_v6, %v1678_v17 }
 0x176   : > { %v1656_v15 = vadd.f32 %v1655_v51, %v1654_v50 }
 0x177   : > { %v1681_v7 = vrot.slane %v1680_v18, 2 }
 0x178   : > { %v1657_v26 = vrot.slane %v1656_v15, 1 }
 0x179   : > { %v1682_v4 = vadd.f32 %v1681_v7, %v1680_v18 }
 0x17a   : > { %v1658_v3 = vadd.f32 %v1657_v26, %v1656_v15 }
 0x17b   : > { %v1683_v56 = vrot.slane %v1682_v4, 1 }
 0x17c   : > { %v1685_v1 = vmul.f32 0.020408163, %v1658_v3 }
 0x17d   : > { %v1684_v20 = vadd.f32 %v1683_v56, %v1682_v4 }
 0x17e   : > { %v1687_v41 = vmul.f32 %v1685_v1, %v1685_v1 }
 0x17f   : > { %v1686_v13 = vmul.f32 0.020408163, %v1684_v20 }
 0x181   : > { %v1688_v52 = vsub.f32 %v1686_v13, %v1687_v41 }
 0x183   : > { %v1689_v37 = vmax.f32 %v1688_v52, 0.0 }
 0x185   : > { %v1691_v14 = vadd.f32 1e-05, %v1689_v37 }
 0x187   : > { %1959 = vrsqrt.f32 %v1691_v14 }
 0x194   : > { %v1960_v33 = vpop.eup %1959 }
 0x195   : > { %v1693_v44 = vmul.f32 %v1960_v33, %v1690_v32 }
 0x197   : > { %v1695_v30 = vmul.f32 %v1693_v44, %v1685_v1  ;;  %v1701_v38 = vrot.slane %v1693_v44, %v2438_v2 }
 0x199   : > { %v1696_v46 = vsub.f32 %v1694_v35, %v1695_v30  ;;  %v1703_v24 = vmul.f32 %v1701_v38, %v3182_v0  ;;  %v1704_v61 = vmul.f32 %v1701_v38, %v3184_v45  ;;  %v1705_v34 = vmul.f32 %v1701_v38, %v3186_v29 }
 0x19a   : > { %v1706_v60 = vmul.f32 %v1701_v38, %v3189_v8  ;;  %v1707_v22 = vmul.f32 %v1701_v38, %v3192_v21  ;;  %v1708_v54 = vmul.f32 %v1701_v38, %v3200_v31  ;;  %v1709_v40 = vmul.f32 %v1701_v38, %v1638_v36 }
 0x19b   : > { %v1714_v28 = vrot.slane %v1696_v46, %v2438_v2 }
 0x19d   : > { %v1716_v0 = vadd.f32 %v1714_v28, %v1703_v24  ;;  %v1717_v45 = vadd.f32 %v1714_v28, %v1704_v61  ;;  %v1718_v29 = vadd.f32 %v1714_v28, %v1705_v34  ;;  %v1719_v8 = vadd.f32 %v1714_v28, %v1706_v60 }
 0x19e   : > { %v1720_v21 = vadd.f32 %v1714_v28, %v1707_v22  ;;  %v1721_v31 = vadd.f32 %v1714_v28, %v1708_v54  ;;  %v1722_v36 = vadd.f32 %v1714_v28, %v1709_v40 }
 0x19f   : > { %1723 = vst [vmem:[%s318_s21] sm:$0x7f] %v1716_v0  ;;  %1724 = vst [vmem:[%s318_s21 + $0x8] sm:$0x7f] %v1717_v45 }
 0x1a0   : > { %1725 = vst [vmem:[%s318_s21 + $0x10] sm:$0x7f] %v1718_v29  ;;  %1726 = vst [vmem:[%s318_s21 + $0x18] sm:$0x7f] %v1719_v8 }
 0x1a1   : > { %1727 = vst [vmem:[%s318_s21 + $0x20] sm:$0x7f] %v1720_v21  ;;  %1728 = vst [vmem:[%s318_s21 + $0x28] sm:$0x7f] %v1721_v31 }
 0x1a2   : > { %1729 = vst [vmem:[%s318_s21 + $0x30] sm:$0x7f] %v1722_v36 }
 0x1a3   : > { %2109 = shalt.err (!%p2106_p10)
}
 0x1a4   : > { %s2110_s22 = scalar_lea.hbm %s3245_s8, 896  ;;  %s2114_s30 = scalar_lea.hbm %s3293_s4, 9856 }
 0x1a5   : > { %p2111_p11 = scmp.ne.s32.totalorder %s3245_s8, %s2110_s22  ;;  %p2115_p7 = scmp.lt.s32.totalorder %s3245_s8, %s3293_s4 }
 0x1a6   : > { %p2116_p8 = scmp.lt.s32.totalorder %s2114_s30, %s2110_s22 }
 0x1a7   : > { %p2112_p1 = pnand %p2111_p11, %p3318_p9 }
 0x1a8   : > { %p2117_p3 = por %p2116_p8, %p2115_p7 }
 0x1a9   : > { %p2113_p5 = pneg %p2112_p1 }
 0x1ab   : > { %p2118_p12 = pnand %p2117_p3, %p2113_p5 }
 0x1ad   : > { %2121 = shalt.err (!%p2118_p12)
}
 0x1ae   : > { %s2178_s23 = smov 128   ;;  %s2179_s5 = smov 1408  }
 0x1af   : > { %s2180_s10 = smov 8  }
 0x1b0   : > { %1900 = dma.vmem_to_hbm [thread:$0]  (%p3318_p9), %s3247_s17, 896, %s3245_s8, %s1731_s19, %s2178_s23, %s2179_s5, %s2180_s10  }
 0x1b1 PF: > { %s3319_s1 = sld [smem:[#allocation18_spill]]  ;;  %p1920_p13 = scmp.ge.s32.totalorder %s2168_s18, 2 }
 0x1b2   : > { %s1758_s25 = sand.u32 1, %s2156_s15  }
 0x1b3   : > { %s1759_s24 = scalar_lea.sflag [#allocation4], %s1758_s25 }
 0x1b7   : > { %p3320_p0 = scmp.ne.s32.totalorder %s3319_s1, 0 }
 0x1b9   : > { %p1916_p2 = pnand %p1920_p13, %p3320_p0 }
 0x1bb   : > { %p1917_p4 = pneg %p1916_p2 }
 0x1bd   : > { %2151 = dma.done.wait (%p1917_p4), %s1759_s24, 896  }
 0x1be   : > { %2153 = vsyncadd (%p1917_p4), %s1759_s24, 4294966400  ;;  %s3321_s18 = sld [smem:[#allocation16_spill]]  ;;  %s3324_s15 = smov %s2160_s16 }
 0x1bf   : > { %s3322_s21 = sld [smem:[#allocation15_spill]] }
 0x1c0   : > { %s3323_s17 = sld [smem:[#allocation17_spill]] }
 0x1c4   : > { %p23_p6 = scmp.ge.s32.totalorder %s3321_s18, 13  }
 0x1c5   : > { %s3325_s16 = smov %s3322_s21 }
 0x1c6   :  { %25 = sbr.rel (!%p23_p6) target bundleno = 11 (0xb), region = 118 }
 0x1cb   :  { %1764 = vsyncpa [#allocation3], 1 }
 0x1cc   :  { %1766 = vsyncpa [#allocation3 + $0x1], 1 }
 0x1cd   :  { %1767 = vsyncpa [#allocation6], 1 }
 0x1ce   :  { %1769 = vsyncpa [#allocation6 + $0x1], 1 }
 0x1cf   :  { %1770 = vsyncpa [#allocation9], 1 }
 0x1d0   :  { %1772 = vsyncpa [#allocation9 + $0x1], 1 }
 0x1d1   :  { %1773 = vsyncpa [#allocation4], 1 }
 0x1d2   :  { %1775 = vsyncpa [#allocation4 + $0x1], 1 }

</bundles_post_ra>
